<compile_context>
chip_gen: v7x
topology: tpu7x:2x2x1
jax: 0.10.0
libtpu: 0.0.40
codegen_flags: <defaults>
</compile_context>

<pallas_src>
import functools

import jax
import jax.numpy as jnp
from jax import lax
from jax.experimental import pallas as pl
from jax.experimental.pallas import tpu as pltpu

LANE = 128
SUBLANE = 8


def _round_up(x, m):
    return (x + m - 1) // m * m


def _pick_strip_height(Ho, Wo, max_strip_pixels=1024):
    """Largest strip height th (dividing Ho) with th*Wo a multiple of 128
    (lane-dense output stores) and <= max_strip_pixels (bounds per-step VMEM,
    which matters most on v7x's 64 MiB).  Falls back to one whole-image strip
    (full-dim block is always a legal BlockSpec)."""
    best = None
    for th in range(1, Ho + 1):
        if Ho % th == 0 and (th * Wo) % LANE == 0 and th * Wo <= max_strip_pixels:
            best = th
    return best if best is not None else Ho


# ---------------------------------------------------------------------------
# Fused kernel: im2col packing + ONE MXU matmul (depthwise AND pointwise)
# ---------------------------------------------------------------------------
def _sepconv_kernel(x_ref, w_ref, o_ref, *, th, Wo, k, cin):
    # x_ref: (1, Hp, Wp, Cin)      replicate-padded NHWC, real channel count
    # w_ref: (Cout_pad, K_pad)     folded depthwise*pointwise weights
    # o_ref: (1, Cout_pad, th*Wo)  channel-major, lane-dense output strip
    s = pl.program_id(1)
    row0 = s * th                       # first output row of this strip
    k_pad = w_ref.shape[1]
    K = k * k * cin

    # Load the strip's input rows (+ k-1 halo rows) once; the dynamic offset
    # is on a leading (untiled) dim, so this is a cheap VMEM load.
    x = x_ref[0, pl.ds(row0, th + k - 1), :, :]           # (th+k-1, Wp, Cin)

    # Hoist the sublane-misaligned W shifts out of the tap loop: k shifted
    # slices instead of k*k; the i shifts below are free leading-dim slices.
    cols = [x[:, j:j + Wo, :] for j in range(k)]          # (th+k-1, Wo, Cin)

    # im2col packing: lane index (i*k + j)*Cin + c, zero-padded to K_pad=128.
    parts = [cols[j][i:i + th] for i in range(k) for j in range(k)]
    if k_pad > K:
        parts.append(jnp.zeros((th, Wo, k_pad - K), x.dtype))
    packed = jnp.concatenate(parts, axis=-1)              # (th, Wo, K_pad)
    # Free view when Wo % 8 == 0 (sublane-aligned merge); else a relayout.
    packed = packed.reshape(th * Wo, k_pad)               # (rows, K_pad)

    # ONE MXU matmul does depthwise + pointwise, channel-major result.
    out = lax.dot_general(
        w_ref[...], packed,
        dimension_numbers=(((1,), (1,)), ((), ())),       # W @ packed^T
        preferred_element_type=jnp.float32)               # (Cout_pad, rows)
    o_ref[0] = out.astype(o_ref.dtype)


# ---------------------------------------------------------------------------
# Weight preparation (done ONCE, outside the jitted forward)
# ---------------------------------------------------------------------------
def prepare_weights(dw_w, pw_w):
    """Fold depthwise + pointwise into a single matmul weight.

    dw_w: (Cin, 1, k, k) PyTorch depthwise weight (groups=Cin).
    pw_w: (Cout, Cin, 1, 1) PyTorch pointwise weight.
    Returns (Cout_pad8, K_pad128) with
      W[o, (i*k+j)*Cin + c] = dw_w[c,0,i,j] * pw_w[o,c,0,0].
    Legal because there is no bias / nonlinearity between the two convs.
    """
    cin, _, k, _ = dw_w.shape
    cout = pw_w.shape[0]
    K = k * k * cin
    k_pad = _round_up(K, LANE)
    cout_pad = _round_up(cout, SUBLANE)
    dw = dw_w[:, 0]                         # (Cin, k, k)
    pw = pw_w[:, :, 0, 0]                   # (Cout, Cin)
    comb = jnp.einsum("oc,cij->oijc", pw, dw).reshape(cout, K)
    comb = jnp.pad(comb, ((0, cout_pad - cout), (0, k_pad - K)))
    return comb.astype(jnp.float32)


# ---------------------------------------------------------------------------
# Forward pass (matches SeparableConv2d.forward, bias=False)
# ---------------------------------------------------------------------------
def separable_conv2d(x, w_comb, *, kernel_size, padding, c_out):
    """x: (B, Cin, H, W) NCHW f32; w_comb from prepare_weights -> NCHW out."""
    B, cin, H, W = x.shape
    k = kernel_size
    cout_pad, k_pad = w_comb.shape
    Hp, Wp = H + 2 * padding, W + 2 * padding
    Ho, Wo = Hp - k + 1, Wp - k + 1

    # Layout glue (2 XLA passes; NO 128-lane channel padding any more).
    x_cl = jnp.transpose(x, (0, 2, 3, 1))                         # NHWC
    if padding:
        x_cl = jnp.pad(
            x_cl, ((0, 0), (padding, padding), (padding, padding), (0, 0)),
            mode="edge")                                          # replicate

    th = _pick_strip_height(Ho, Wo)
    n_strips = Ho // th
    strip = th * Wo

    # VMEM budget derived from the blocks actually used (minor dim occupies
    # full 128-lane tiles in VMEM regardless of Cin), with headroom.
    def _vmem(rows, lanes):
        return _round_up(rows, SUBLANE) * _round_up(lanes, LANE) * 4

    in_block = Hp * _vmem(Wp, cin)
    w_block = _vmem(cout_pad, k_pad)
    out_block = _vmem(cout_pad, strip)
    tmp = ((th + k) * _vmem(Wp, cin)
           + (k + k * k + 2) * (th + k) * _vmem(Wo, k_pad)
           + out_block)
    est = 2 * in_block + 2 * w_block + 2 * out_block + tmp
    vmem_limit = max(32 * 1024 * 1024, min(int(1.5 * est), 100 * 1024 * 1024))

    kern = functools.partial(_sepconv_kernel, th=th, Wo=Wo, k=k, cin=cin)
    out = pl.pallas_call(
        kern,
        grid=(B, n_strips),
        in_specs=[
            # Whole padded image of the current batch element; block index is
            # constant in `s`, so it is DMA'd once per image.
            pl.BlockSpec((1, Hp, Wp, cin), lambda b, s: (b, 0, 0, 0)),
            # Folded weights: tiny constant block.
            pl.BlockSpec((cout_pad, k_pad), lambda b, s: (0, 0)),
        ],
        out_specs=pl.BlockSpec((1, cout_pad, strip), lambda b, s: (b, 0, s)),
        out_shape=jax.ShapeDtypeStruct((B, cout_pad, Ho * Wo), jnp.float32),
        compiler_params=pltpu.CompilerParams(
            dimension_semantics=("parallel", "parallel"),
            vmem_limit_bytes=vmem_limit,
        ),
    )(x_cl, w_comb)

    # Channel-major output: NCHW is a pure slice + reshape (no transpose).
    return out[:, :c_out, :].reshape(B, c_out, Ho, Wo)


# ---------------------------------------------------------------------------
# Pure-JAX reference (PyTorch semantics: cross-correlation, replicate pad,
# no bias) for the correctness self-check.
# ---------------------------------------------------------------------------
def ref_separable_conv2d(x, dw_w, pw_w, padding):
    B, C, H, W = x.shape
    k = dw_w.shape[-1]
    xp = jnp.pad(x, ((0, 0), (0, 0), (padding, padding), (padding, padding)),
                 mode="edge")
    Ho = H + 2 * padding - k + 1
    Wo = W + 2 * padding - k + 1
    dw_out = jnp.zeros((B, C, Ho, Wo), jnp.float32)
    for i in range(k):
        for j in range(k):
            dw_out = dw_out + (xp[:, :, i:i + Ho, j:j + Wo] *
                               dw_w[:, 0, i, j][None, :, None, None])
    return jnp.einsum("oc,bchw->bohw", pw_w[:, :, 0, 0], dw_out)


if __name__ == "__main__":
    def run_case(key, B, Cin, H, W, Cout, k, padding):
        kx, kd, kp = jax.random.split(key, 3)
        x = jax.random.normal(kx, (B, Cin, H, W), jnp.float32)
        dw_w = jax.random.normal(kd, (Cin, 1, k, k), jnp.float32) * 0.2
        pw_w = jax.random.normal(kp, (Cout, Cin, 1, 1), jnp.float32) * 0.2
        w_comb = prepare_weights(dw_w, pw_w)          # hoisted out of forward
        fwd = jax.jit(functools.partial(
            separable_conv2d, kernel_size=k, padding=padding, c_out=Cout))
        out = jax.block_until_ready(fwd(x, w_comb))
        ref = ref_separable_conv2d(x, dw_w, pw_w, padding)
        assert out.shape == ref.shape, (out.shape, ref.shape)
        max_err = float(jnp.max(jnp.abs(out - ref)))
        assert jnp.allclose(out, ref, rtol=1e-4, atol=2e-5), max_err

    key = jax.random.PRNGKey(0)
    k0, k1 = jax.random.split(key)
    # SeparableConv2d(in=4, out=8, kernel_size=3, padding=1) on (2, 4, 16, 16)
    run_case(k0, B=2, Cin=4, H=16, W=16, Cout=8, k=3, padding=1)
    # Larger spatial case: exercises the multi-strip grid and the
    # channel-padding (Cout < Cout_pad) paths.
    run_case(k1, B=1, Cin=3, H=64, W=64, Cout=6, k=3, padding=1)
    print("KERNEL_OK")
</pallas_src>

<mosaic_0001>
module attributes {stable_mosaic.version = 11 : i64} {
  func.func @_sepconv_kernel(%arg0: i32, %arg1: i32, %arg2: memref<1x18x18x4xf32, #tpu.memory_space<vmem>>, %arg3: memref<8x128xf32, #tpu.memory_space<vmem>>, %arg4: memref<1x8x256xf32, #tpu.memory_space<vmem>>) attributes {dimension_semantics = [#tpu.dimension_semantics<parallel>, #tpu.dimension_semantics<parallel>], iteration_bounds = array<i64: 2, 1>, scalar_prefetch = 0 : i64, scratch_operands = 0 : i64, tpu.core_type = #tpu.core_type<tc>, window_params = [{transform_indices = @transform_0, window_bounds = array<i64: 1, 18, 18, 4>}, {pipeline_mode = #tpu.pipeline_mode<synchronous>, transform_indices = @transform_1, window_bounds = array<i64: 8, 128>}, {transform_indices = @transform_2, window_bounds = array<i64: 1, 8, 256>}]} {
    %c16_i32 = arith.constant 16 : i32
    %0 = arith.muli %arg1, %c16_i32 : i32
    %c0 = arith.constant 0 : index
    %1 = arith.index_cast %0 : i32 to index
    %c0_0 = arith.constant 0 : index
    %c0_1 = arith.constant 0 : index
    %2 = vector.load %arg2[%c0, %1, %c0_0, %c0_1] : memref<1x18x18x4xf32, #tpu.memory_space<vmem>>, vector<1x18x18x4xf32>
    %3 = vector.shape_cast %2 : vector<1x18x18x4xf32> to vector<18x18x4xf32>
    %4 = vector.extract_strided_slice %3 {offsets = [0, 0, 0], sizes = [18, 16, 4], strides = [1, 1, 1]} : vector<18x18x4xf32> to vector<18x16x4xf32>
    %5 = vector.extract_strided_slice %3 {offsets = [0, 1, 0], sizes = [18, 16, 4], strides = [1, 1, 1]} : vector<18x18x4xf32> to vector<18x16x4xf32>
    %6 = vector.extract_strided_slice %3 {offsets = [0, 2, 0], sizes = [18, 16, 4], strides = [1, 1, 1]} : vector<18x18x4xf32> to vector<18x16x4xf32>
    %7 = vector.extract_strided_slice %4 {offsets = [0, 0, 0], sizes = [16, 16, 4], strides = [1, 1, 1]} : vector<18x16x4xf32> to vector<16x16x4xf32>
    %8 = vector.extract_strided_slice %5 {offsets = [0, 0, 0], sizes = [16, 16, 4], strides = [1, 1, 1]} : vector<18x16x4xf32> to vector<16x16x4xf32>
    %9 = vector.extract_strided_slice %6 {offsets = [0, 0, 0], sizes = [16, 16, 4], strides = [1, 1, 1]} : vector<18x16x4xf32> to vector<16x16x4xf32>
    %10 = vector.extract_strided_slice %4 {offsets = [1, 0, 0], sizes = [16, 16, 4], strides = [1, 1, 1]} : vector<18x16x4xf32> to vector<16x16x4xf32>
    %11 = vector.extract_strided_slice %5 {offsets = [1, 0, 0], sizes = [16, 16, 4], strides = [1, 1, 1]} : vector<18x16x4xf32> to vector<16x16x4xf32>
    %12 = vector.extract_strided_slice %6 {offsets = [1, 0, 0], sizes = [16, 16, 4], strides = [1, 1, 1]} : vector<18x16x4xf32> to vector<16x16x4xf32>
    %13 = vector.extract_strided_slice %4 {offsets = [2, 0, 0], sizes = [16, 16, 4], strides = [1, 1, 1]} : vector<18x16x4xf32> to vector<16x16x4xf32>
    %14 = vector.extract_strided_slice %5 {offsets = [2, 0, 0], sizes = [16, 16, 4], strides = [1, 1, 1]} : vector<18x16x4xf32> to vector<16x16x4xf32>
    %15 = vector.extract_strided_slice %6 {offsets = [2, 0, 0], sizes = [16, 16, 4], strides = [1, 1, 1]} : vector<18x16x4xf32> to vector<16x16x4xf32>
    %cst = arith.constant 0.000000e+00 : f32
    %16 = vector.broadcast %cst : f32 to vector<16x16x92xf32>
    %17 = tpu.concatenate %7, %8, %9, %10, %11, %12, %13, %14, %15, %16 in 2 : vector<16x16x4xf32>, vector<16x16x4xf32>, vector<16x16x4xf32>, vector<16x16x4xf32>, vector<16x16x4xf32>, vector<16x16x4xf32>, vector<16x16x4xf32>, vector<16x16x4xf32>, vector<16x16x4xf32>, vector<16x16x92xf32> -> vector<16x16x128xf32>
    %18 = vector.shape_cast %17 : vector<16x16x128xf32> to vector<256x128xf32>
    %c0_2 = arith.constant 0 : index
    %c0_3 = arith.constant 0 : index
    %19 = vector.load %arg3[%c0_2, %c0_3] : memref<8x128xf32, #tpu.memory_space<vmem>>, vector<8x128xf32>
    %cst_4 = arith.constant dense<0.000000e+00> : vector<8x256xf32>
    %20 = tpu.matmul %19, %18, %cst_4 {dimension_numbers = #tpu.dot_dimension_numbers<[1], [1], [0], [0], [0, 0, 1, 0], [], []>} : vector<8x128xf32>, vector<256x128xf32>, vector<8x256xf32> -> vector<8x256xf32>
    %c0_5 = arith.constant 0 : index
    %c0_6 = arith.constant 0 : index
    %c0_7 = arith.constant 0 : index
    %21 = vector.load %arg4[%c0_5, %c0_6, %c0_7] : memref<1x8x256xf32, #tpu.memory_space<vmem>>, vector<1x8x256xf32>
    %22 = vector.shape_cast %21 : vector<1x8x256xf32> to vector<8x256xf32>
    %23 = vector.shape_cast %20 : vector<8x256xf32> to vector<1x8x256xf32>
    tpu.vector_store %arg4[%c0_5, %c0_6, %c0_7], %23 {strides = array<i32>} : memref<1x8x256xf32, #tpu.memory_space<vmem>>, vector<1x8x256xf32>,
    return
  }
  func.func @transform_0(%arg0: i32, %arg1: i32) -> (i32, i32, i32, i32) {
    %c0_i32 = arith.constant 0 : i32
    %c0_i32_0 = arith.constant 0 : i32
    %c0_i32_1 = arith.constant 0 : i32
    %c0_i32_2 = arith.constant 0 : i32
    return %arg0, %c0_i32, %c0_i32_0, %c0_i32_1 : i32, i32, i32, i32
  }
  func.func @transform_1(%arg0: i32, %arg1: i32) -> (i32, i32) {
    %c0_i32 = arith.constant 0 : i32
    %c0_i32_0 = arith.constant 0 : i32
    %c0_i32_1 = arith.constant 0 : i32
    return %c0_i32, %c0_i32_0 : i32, i32
  }
  func.func @transform_2(%arg0: i32, %arg1: i32) -> (i32, i32, i32) {
    %c0_i32 = arith.constant 0 : i32
    %c0_i32_0 = arith.constant 0 : i32
    return %arg0, %c0_i32, %arg1 : i32, i32, i32
  }
}

</mosaic_0001>

<bundles_post_ra>
// kernel: separable_conv2d.1
= control target key start
LH: loop header
LB: loop body
LE: loop exit
PB: predicated region body
PF: predicated region fallthrough
CT: control target
= control target key end

     0   :  { %s2541_s9 = smov 0   ;;  %s2543_s10 = smov 0   ;;  %s3828_s0 = inlined_call_operand.vmem [shape: f32[2,18,18,4], index: 0, kind: input, shape index: {}]   ;;  %s3829_s1 = inlined_call_operand.vmem [shape: f32[8,128], index: 1, kind: input, shape index: {}]   ;;  %s3830_s2 = inlined_call_operand.vmem [shape: f32[2,8,256], index: 2, kind: output, shape index: {}]  }
   0x1   :  { %s2545_s11 = smov 0  }
   0x2 LB: > { %s24_s12 = sadd.s32 1, %s2512_s10  ;;  %p1686_p0 = scmp.ge.s32.totalorder %s2516_s11, 1  ;;  %s2516_s11 = sphi %s2545_s11, %s12_s11   ;;  %s2512_s10 = sphi %s2543_s10, %s3922_s10   ;;  %s2508_s9 = sphi %s2541_s9, %s3921_s9  }
   0x3   : > { %p26_p1 = scmp.ge.s32.totalorder %s24_s12, 2  ;;  %p126_p2 = scmp.lt.s32.totalorder %s2516_s11, 3 }
   0x5   : > { %s3924_s12 = smov (%p26_p1, %s24_s12), 0  ;;  %p127_p3 = pnand %p1686_p0, %p126_p2 }
   0x7   : > { %130 = sbr.rel (%p127_p3) target bundleno = 622 (0x26e), region = 28 }
   0xe   : > { %p152_p4 = scmp.lt.s32.totalorder %s2508_s9, 1  ;;  %vm272_vm0 = vcmask 1046528   ;;  %s2518_s17 = smov 4   ;;  %vm449_vm1 = vcmask 1045504   ;;  %vm1228_vm2 = vcmask 31744   ;;  %vm1261_vm3 = vcmask 64512  }
   0xf   : > { %s2519_s18 = smov 8   ;;  %s2520_s19 = smov 12   ;;  %vm1294_vm4 = vcmask 97280   ;;  %vm1327_vm5 = vcmask 130048   ;;  %vm1360_vm6 = vcmask 162816   ;;  %vm1393_vm7 = vcmask 195584  }
  0x10   : > { %s3926_s9 = smov (!%p152_p4, %s2508_s9), 1  ;;  %s2521_s20 = smov 16   ;;  %vm1426_vm8 = vcmask 228352   ;;  %vm1459_vm9 = vcmask 261120   ;;  %vm1492_vm10 = vcmask 293888  }
  0x11   : > { %s1807_s13 = smul.u32 432, %s3926_s9  ;;  %s2522_s21 = smov 20   ;;  %vm3444_vm11 = vmpackc.low %vm1492_vm10, %vm1492_vm10 }
  0x12   : > { %s2523_s22 = smov 24   ;;  %s2524_s23 = smov 28  }
  0x13   : > { %s2565_s16 = scalar_lea.vmem %s3828_s0, %s1807_s13  ;;  %s2525_s24 = smov 32  }
  0x14   : > { %v2568_v0 = vld [vmem:[%s2565_s16 + $0x30] sm:$0xff]  ;;  %v2571_v1 = vld [vmem:[%s2565_s16 + $0x38] sm:$0xff]  ;;  %v2574_v2 = vld [vmem:[%s2565_s16 + $0x40] sm:$0x3]  ;;  %s1724_s27 = sshll.u32 %s3926_s9, 4 }
  0x15   : > { %v283_v3 = vrot.slane %v2568_v0, 1  ;;  %v284_v4 = vrot.slane %v2571_v1, 1  ;;  %v286_v5 = vrot.slane %v2574_v2, 1  ;;  %v2580_v6 = vld [vmem:[%s2565_s16] sm:$0xff]  ;;  %v2583_v7 = vld [vmem:[%s2565_s16 + $0x8] sm:$0xff]  ;;  %v2594_v12 = vld [vmem:[%s2565_s16 + $0x50] sm:$0xff]  ;;  %s165_s30 = scalar_lea.vmem %s3830_s2, %s1724_s27 }
  0x16   : > { %v2586_v8 = vld [vmem:[%s2565_s16 + $0x10] sm:$0x3]  ;;  %v273_v9 = vrot.slane %v2580_v6, 1  ;;  %v274_v10 = vrot.slane %v2583_v7, 1  ;;  %v2591_v11 = vld [vmem:[%s2565_s16 + $0x48] sm:$0xff]  ;;  %v2603_v17 = vld [vmem:[%s2565_s16 + $0x18] sm:$0xff] }
  0x17   : > { %v285_v13 = vsel %vm272_vm0, %v283_v3, %v284_v4  ;;  %v287_v14 = vsel %vm272_vm0, %v284_v4, %v286_v5  ;;  %v276_v15 = vrot.slane %v2586_v8, 1  ;;  %v2600_v16 = vld [vmem:[%s2565_s16 + $0x58] sm:$0x3]  ;;  %v2606_v18 = vld [vmem:[%s2565_s16 + $0x20] sm:$0xff]  ;;  %v288_v21 = vrot.slane %v2591_v11, 1  ;;  %v2638_v36 = vld [vmem:[%s2565_s16 + $0x68] sm:$0xff] }
  0x18   : > { %v2608_v19 = vpack.i.bf16 %v287_v14, %v285_v13  ;;  %v275_v20 = vsel %vm272_vm0, %v273_v9, %v274_v10  ;;  %v289_v22 = vrot.slane %v2594_v12, 1  ;;  %v2614_v23 = vld [vmem:[%s2565_s16 + $0x28] sm:$0x3]  ;;  %v2617_v24 = vld [vmem:[%s2565_s16 + $0x78] sm:$0xff]  ;;  %v2620_v25 = vld [vmem:[%s2565_s16 + $0x80] sm:$0xff]  ;;  %v291_v27 = vrot.slane %v2600_v16, 1 }
  0x19   : > { %v277_v26 = vsel %vm272_vm0, %v274_v10, %v276_v15  ;;  %v278_v28 = vrot.slane %v2603_v17, 1  ;;  %v279_v29 = vrot.slane %v2606_v18, 1  ;;  %v2627_v30 = vld [vmem:[%s2565_s16 + $0x88] sm:$0x3]  ;;  %v2630_v31 = vld [vmem:[%s2565_s16 + $0x60] sm:$0xff]  ;;  %v281_v34 = vrot.slane %v2614_v23, 1 }
  0x1a   : > { %3863 = vst [vmem:[#allocation2_spill] sm:$0xff] %v2608_v19  ;;  %1851 = vrot.lane.b32.xlu1 %v2608_v19, %s2518_s17  ;;  %v1840_v32 = vpack.i.bf16 %v277_v26, %v275_v20  ;;  %v290_v33 = vsel %vm272_vm0, %v288_v21, %v289_v22  ;;  %v298_v35 = vrot.slane %v2617_v24, 1  ;;  %v2641_v37 = vld [vmem:[%s2565_s16 + $0x70] sm:$0x3]  ;;  %v292_v38 = vsel %vm272_vm0, %v289_v22, %v291_v27  ;;  %v2648_v42 = vld [vmem:[%s2565_s16 + $0xa8] sm:$0xff]  ;;  %v2666_v50 = vld [vmem:[%s2565_s16 + $0x98] sm:$0xff] }
  0x1b   : > { %v280_v39 = vsel %vm272_vm0, %v278_v28, %v279_v29  ;;  %v299_v40 = vrot.slane %v2620_v25, 1  ;;  %v301_v41 = vrot.slane %v2627_v30, 1  ;;  %v2651_v43 = vld [vmem:[%s2565_s16 + $0xb0] sm:$0xff]  ;;  %v2654_v44 = vpack.i.bf16 %v292_v38, %v290_v33  ;;  %v2660_v48 = vld [vmem:[%s2565_s16 + $0xb8] sm:$0x3]  ;;  %v2687_v61 = vld [vmem:[%s2565_s16 + $0xe0] sm:$0xff] }
  0x1c   : > { %1841 = vrot.lane.b32.xlu0 %v1840_v32, %s2518_s17  ;;  %v282_v45 = vsel %vm272_vm0, %v279_v29, %v281_v34  ;;  %v293_v46 = vrot.slane %v2630_v31, 1  ;;  %v294_v47 = vrot.slane %v2638_v36, 1  ;;  %v2663_v49 = vld [vmem:[%s2565_s16 + $0x90] sm:$0xff]  ;;  %v296_v54 = vrot.slane %v2641_v37, 1  ;;  %v2674_v55 = vld [vmem:[%s2565_s16 + $0xa0] sm:$0x3] }
  0x1d   : > { %3864 = vst [vmem:[#allocation3_spill] sm:$0xff] %v2654_v44  ;;  %v2668_v51 = vpack.i.bf16 %v282_v45, %v280_v39  ;;  %v300_v52 = vsel %vm272_vm0, %v298_v35, %v299_v40  ;;  %v302_v53 = vsel %vm272_vm0, %v299_v40, %v301_v41  ;;  %v2677_v56 = vld [vmem:[%s2565_s16 + $0xd8] sm:$0xff]  ;;  %v308_v59 = vrot.slane %v2648_v42, 1  ;;  %v2690_v62 = vld [vmem:[%s2565_s16 + $0xe8] sm:$0x3]  ;;  %v2697_v9 = vld [vmem:[%s2565_s16 + $0xc0] sm:$0xff] }
  0x1e   : > { %1856 = vrot.lane.b32.xlu1 %v2654_v44, %s2518_s17  ;;  %v2681_v57 = vpack.i.bf16 %v302_v53, %v300_v52  ;;  %v295_v58 = vsel %vm272_vm0, %v293_v46, %v294_v47  ;;  %v309_v60 = vrot.slane %v2651_v43, 1  ;;  %v297_v63 = vsel %vm272_vm0, %v294_v47, %v296_v54  ;;  %v2700_v10 = vld [vmem:[%s2565_s16 + $0xc8] sm:$0xff]  ;;  %v2710_v21 = vld [vmem:[%s2565_s16 + $0xd0] sm:$0x3]  ;;  %v2730_v39 = vld [vmem:[%s2565_s16 + $0x118] sm:$0x3] }
  0x1f   : > { %3865 = vst [vmem:[#allocation4_spill] sm:$0xff] %v2668_v51  ;;  %v311_v3 = vrot.slane %v2660_v48, 1  ;;  %v303_v4 = vrot.slane %v2663_v49, 1  ;;  %v304_v5 = vrot.slane %v2666_v50, 1  ;;  %v2704_v13 = vpack.i.bf16 %v297_v63, %v295_v58  ;;  %v2717_v29 = vld [vmem:[%s2565_s16 + $0x108] sm:$0xff]  ;;  %v2720_v32 = vld [vmem:[%s2565_s16 + $0x110] sm:$0xff] }
  0x20   : > { %3866 = vst [vmem:[#allocation5_spill] sm:$0xff] %v2681_v57  ;;  %1846 = vrot.lane.b32.xlu0 %v2668_v51, %s2518_s17  ;;  %v310_v14 = vsel %vm272_vm0, %v308_v59, %v309_v60  ;;  %v306_v15 = vrot.slane %v2674_v55, 1  ;;  %v318_v20 = vrot.slane %v2677_v56, 1  ;;  %v319_v27 = vrot.slane %v2687_v61, 1  ;;  %v2733_v40 = vld [vmem:[%s2565_s16 + $0xf0] sm:$0xff]  ;;  %v2736_v41 = vld [vmem:[%s2565_s16 + $0xf8] sm:$0xff] }
  0x21   : > { %3867 = vst [vmem:[#allocation6_spill] sm:$0xff] %v2704_v13  ;;  %v312_v22 = vsel %vm272_vm0, %v309_v60, %v311_v3  ;;  %v305_v26 = vsel %vm272_vm0, %v303_v4, %v304_v5  ;;  %v321_v28 = vrot.slane %v2690_v62, 1  ;;  %v313_v35 = vrot.slane %v2697_v9, 1  ;;  %v2742_v52 = vld [vmem:[%s2565_s16 + $0x100] sm:$0x3]  ;;  %v2745_v53 = vld [vmem:[%s2565_s16 + $0x138] sm:$0xff] }
  0x22   : > { %1866 = vrot.lane.b32.xlu1 %v2681_v57, %s2518_s17  ;;  %v2724_v33 = vpack.i.bf16 %v312_v22, %v310_v14  ;;  %v307_v34 = vsel %vm272_vm0, %v304_v5, %v306_v15  ;;  %v314_v38 = vrot.slane %v2700_v10, 1  ;;  %v320_v45 = vsel %vm272_vm0, %v318_v20, %v319_v27  ;;  %v2755_v63 = vld [vmem:[%s2565_s16 + $0x140] sm:$0xff]  ;;  %v2758_v3 = vld [vmem:[%s2565_s16 + $0x148] sm:$0x3]  ;;  %v2801_v44 = vld [vmem:[%s2565_s16 + $0x150] sm:$0xff] }
  0x23   : > { %v322_v46 = vsel %vm272_vm0, %v319_v27, %v321_v28  ;;  %v316_v47 = vrot.slane %v2710_v21, 1  ;;  %v2749_v54 = vpack.i.bf16 %v307_v34, %v305_v26  ;;  %v328_v59 = vrot.slane %v2717_v29, 1  ;;  %3870 = vst [vmem:[#allocation9_spill] sm:$0xff] %v2758_v3  ;;  %v2765_v20 = vld [vmem:[%s2565_s16 + $0x120] sm:$0xff]  ;;  %v2768_v22 = vld [vmem:[%s2565_s16 + $0x128] sm:$0xff]  ;;  %3875 = vst [vmem:[#allocation14_spill] sm:$0xff] %v2801_v44 }
  0x24   : > { %3868 = vst [vmem:[#allocation7_spill] sm:$0xff] %v2724_v33  ;;  %1861 = vrot.lane.b32.xlu0 %v2704_v13, %s2518_s17  ;;  %v315_v58 = vsel %vm272_vm0, %v313_v35, %v314_v38  ;;  %v329_v60 = vrot.slane %v2720_v32, 1  ;;  %v331_v5 = vrot.slane %v2730_v39, 1  ;;  %v323_v14 = vrot.slane %v2733_v40, 1  ;;  %3871 = vst [vmem:[#allocation10_spill] sm:$0xff] %v2765_v20  ;;  %v2804_v19 = vld [vmem:[%s2565_s16 + $0x158] sm:$0xff] }
  0x25   : > { %3869 = vst [vmem:[#allocation8_spill] sm:$0xff] %v2749_v54  ;;  %v317_v4 = vsel %vm272_vm0, %v314_v38, %v316_v47  ;;  %v324_v15 = vrot.slane %v2736_v41, 1  ;;  %3872 = vst [vmem:[#allocation11_spill] sm:$0xff] %v2768_v22  ;;  %v2772_v26 = vpack.i.bf16 %v322_v46, %v320_v45  ;;  %v326_v28 = vrot.slane %v2742_v52, 1  ;;  %v2778_v35 = vld [vmem:[%s2565_s16 + $0x130] sm:$0x3] }
  0x26   : > { %1876 = vrot.lane.b32.xlu1 %v2724_v33, %s2518_s17  ;;  %v330_v27 = vsel %vm272_vm0, %v328_v59, %v329_v60  ;;  %v338_v34 = vrot.slane %v2745_v53, 1  ;;  %v332_v38 = vsel %vm272_vm0, %v329_v60, %v331_v5  ;;  %v339_v33 = vrot.slane %v2755_v63, 1  ;;  %v2785_v46 = vld [vmem:[%s2565_s16 + $0x168] sm:$0xff]  ;;  %v2788_v59 = vld [vmem:[%s2565_s16 + $0x170] sm:$0xff] }
  0x27   : > { %3873 = vst [vmem:[#allocation12_spill] sm:$0xff] %v2772_v26  ;;  %v325_v47 = vsel %vm272_vm0, %v323_v14, %v324_v15  ;;  %v341_v45 = vrot.slane %v2758_v3, 1  ;;  %v2792_v57 = vpack.i.bf16 %v317_v4, %v315_v58  ;;  %v327_v13 = vsel %vm272_vm0, %v324_v15, %v326_v28  ;;  %v2798_v14 = vld [vmem:[%s2565_s16 + $0x178] sm:$0x3]  ;;  %v2810_v58 = vld [vmem:[%s2565_s16 + $0x160] sm:$0x3] }
  0x28   : > { %1871 = vrot.lane.b32.xlu0 %v2749_v54, %s2518_s17  ;;  %v333_v60 = vrot.slane %v2765_v20, 1  ;;  %v334_v5 = vrot.slane %v2768_v22, 1  ;;  %v340_v51 = vsel %vm272_vm0, %v338_v34, %v339_v33  ;;  %v336_v54 = vrot.slane %v2778_v35, 1 }
  0x29   : > { %3874 = vst [vmem:[#allocation13_spill] sm:$0xff] %v2792_v57  ;;  %v342_v3 = vsel %vm272_vm0, %v339_v33, %v341_v45  ;;  %v2814_v4 = vpack.i.bf16 %v332_v38, %v330_v27  ;;  %v2816_v15 = vpack.i.bf16 %v327_v13, %v325_v47  ;;  %v348_v28 = vrot.slane %v2785_v46, 1 }
  0x2a   : > { %1886 = vrot.lane.b32.xlu1 %v2772_v26, %s2518_s17  ;;  %v349_v22 = vrot.slane %v2788_v59, 1  ;;  %v2820_v20 = vpack.i.bf16 %v342_v3, %v340_v51  ;;  %v351_v34 = vrot.slane %v2798_v14, 1  ;;  %v343_v33 = vrot.slane %v2801_v44, 1 }
  0x2b   : > { %3876 = vst [vmem:[#allocation15_spill] sm:$0xff] %v2814_v4  ;;  %v344_v45 = vrot.slane %v2804_v19, 1  ;;  %v335_v27 = vsel %vm272_vm0, %v333_v60, %v334_v5  ;;  %v337_v13 = vsel %vm272_vm0, %v334_v5, %v336_v54  ;;  %v346_v47 = vrot.slane %v2810_v58, 1 }
  0x2c   : > { %3877 = vst [vmem:[#allocation16_spill] sm:$0xff] %v2820_v20  ;;  %1881 = vrot.lane.b32.xlu0 %v2792_v57, %s2518_s17  ;;  %v350_v38 = vsel %vm272_vm0, %v348_v28, %v349_v22  ;;  %v352_v51 = vsel %vm272_vm0, %v349_v22, %v351_v34  ;;  %v455_v26 = vrot.slane %v2603_v17, 2  ;;  %v456_v44 = vrot.slane %v2606_v18, 2 }
  0x2d   : > { %v345_v3 = vsel %vm272_vm0, %v343_v33, %v344_v45  ;;  %v347_v57 = vsel %vm272_vm0, %v344_v45, %v346_v47  ;;  %v458_v60 = vrot.slane %v2614_v23, 2  ;;  %v450_v54 = vrot.slane %v2580_v6, 2 }
  0x2e   : > { %1896 = vrot.lane.b32.xlu1 %v2814_v4, %s2518_s17  ;;  %v451_v5 = vrot.slane %v2583_v7, 2  ;;  %v453_v22 = vrot.slane %v2586_v8, 2  ;;  %v2844_v28 = vpack.i.bf16 %v337_v13, %v335_v27  ;;  %v463_v34 = vrot.slane %v2574_v2, 2 }
  0x2f   : > { %v2847_v33 = vpack.i.bf16 %v352_v51, %v350_v38  ;;  %v2849_v4 = vpack.i.bf16 %v347_v57, %v345_v3  ;;  %v457_v6 = vsel %vm449_vm1, %v455_v26, %v456_v44  ;;  %v459_v7 = vsel %vm449_vm1, %v456_v44, %v458_v60 }
  0x30   : > { %1891 = vrot.lane.b32.xlu0 %v2816_v15, %s2518_s17  ;;  %v452_v8 = vsel %vm449_vm1, %v450_v54, %v451_v5  ;;  %v465_v23 = vrot.slane %v2591_v11, 2  ;;  %v466_v45 = vrot.slane %v2594_v12, 2  ;;  %v468_v27 = vrot.slane %v2600_v16, 2 }
  0x31   : > { %3878 = vst [vmem:[#allocation17_spill] sm:$0xff] %v2847_v33  ;;  %3879 = vst [vmem:[#allocation18_spill] sm:$0xff] %v2849_v4  ;;  %v460_v2 = vrot.slane %v2568_v0, 2  ;;  %v461_v57 = vrot.slane %v2571_v1, 2  ;;  %v454_v13 = vsel %vm449_vm1, %v451_v5, %v453_v22  ;;  %v475_v26 = vrot.slane %v2617_v24, 2 }
  0x32   : > { %1906 = vrot.lane.b32.xlu1 %v2820_v20, %s2518_s17  ;;  %v476_v44 = vrot.slane %v2620_v25, 2  ;;  %v478_v38 = vrot.slane %v2627_v30, 2  ;;  %v2869_v47 = vpack.i.bf16 %v459_v7, %v457_v6  ;;  %v470_v16 = vrot.slane %v2630_v31, 2 }
  0x33   : > { %v471_v51 = vrot.slane %v2638_v36, 2  ;;  %v473_v3 = vrot.slane %v2641_v37, 2  ;;  %v1920_v60 = vpack.i.bf16 %v454_v13, %v452_v8  ;;  %v467_v54 = vsel %vm449_vm1, %v465_v23, %v466_v45 }
  0x34   : > { %1901 = vrot.lane.b32.xlu0 %v2844_v28, %s2518_s17  ;;  %v469_v5 = vsel %vm449_vm1, %v466_v45, %v468_v27  ;;  %v462_v22 = vsel %vm449_vm1, %v460_v2, %v461_v57  ;;  %v464_v30 = vsel %vm449_vm1, %v461_v57, %v463_v34  ;;  %v477_v6 = vsel %vm449_vm1, %v475_v26, %v476_v44 }
  0x35   : > { %v479_v7 = vsel %vm449_vm1, %v476_v44, %v478_v38  ;;  %v486_v37 = vrot.slane %v2651_v43, 2  ;;  %v488_v8 = vrot.slane %v2660_v48, 2  ;;  %v480_v23 = vrot.slane %v2663_v49, 2 }
  0x36   : > { %1916 = vrot.lane.b32.xlu1 %v2847_v33, %s2518_s17  ;;  %v485_v33 = vrot.slane %v2648_v42, 2  ;;  %v481_v45 = vrot.slane %v2666_v50, 2  ;;  %v2889_v27 = vpack.i.bf16 %v469_v5, %v467_v54  ;;  %v472_v34 = vsel %vm449_vm1, %v470_v16, %v471_v51 }
  0x37   : > { %v474_v2 = vsel %vm449_vm1, %v471_v51, %v473_v3  ;;  %v483_v57 = vrot.slane %v2674_v55, 2  ;;  %v2895_v13 = vpack.i.bf16 %v464_v30, %v462_v22  ;;  %v2897_v48 = vpack.i.bf16 %v479_v7, %v477_v6 }
  0x38   : > { %1911 = vrot.lane.b32.xlu0 %v2849_v4, %s2518_s17  ;;  %v495_v26 = vrot.slane %v2677_v56, 2  ;;  %v2900_v44 = vpack.i.bf16 %v474_v2, %v472_v34  ;;  %v487_v38 = vsel %vm449_vm1, %v485_v33, %v486_v37  ;;  %v489_v54 = vsel %vm449_vm1, %v486_v37, %v488_v8 }
  0x39   : > { %v482_v16 = vsel %vm449_vm1, %v480_v23, %v481_v45  ;;  %v484_v55 = vsel %vm449_vm1, %v481_v45, %v483_v57  ;;  %v496_v51 = vrot.slane %v2687_v61, 2  ;;  %v498_v3 = vrot.slane %v2690_v62, 2 }
  0x3a   : > { %1926 = vrot.lane.b32.xlu1 %v2869_v47, %s2519_s18  ;;  %v491_v5 = vrot.slane %v2700_v10, 2  ;;  %v493_v22 = vrot.slane %v2710_v21, 2  ;;  %v505_v33 = vrot.slane %v2717_v29, 2  ;;  %v506_v30 = vrot.slane %v2720_v32, 2  ;;  %v3880_v21 = vld [vmem:[#allocation9_spill] sm:$0xff] }
  0x3b   : > { %v508_v6 = vrot.slane %v2730_v39, 2  ;;  %v500_v7 = vrot.slane %v2733_v40, 2  ;;  %v501_v37 = vrot.slane %v2736_v41, 2  ;;  %v503_v62 = vrot.slane %v2742_v52, 2 }
  0x3c   : > { %1921 = vrot.lane.b32.xlu0 %v1920_v60, %s2519_s18  ;;  %v490_v60 = vrot.slane %v2697_v9, 2  ;;  %v515_v8 = vrot.slane %v2745_v53, 2  ;;  %v516_v23 = vrot.slane %v2755_v63, 2  ;;  %v518_v45 = vrot.slane %v3880_v21, 2 }
  0x3d   : > { %v2926_v34 = vpack.i.bf16 %v489_v54, %v487_v38  ;;  %v2928_v2 = vpack.i.bf16 %v484_v55, %v482_v16  ;;  %v497_v39 = vsel %vm449_vm1, %v495_v26, %v496_v51  ;;  %v499_v57 = vsel %vm449_vm1, %v496_v51, %v498_v3  ;;  %v3881_v16 = vld [vmem:[#allocation10_spill] sm:$0xff]  ;;  %v3882_v3 = vld [vmem:[#allocation11_spill] sm:$0xff] }
  0x3e   : > { %1936 = vrot.lane.b32.xlu1 %v2889_v27, %s2519_s18  ;;  %v492_v4 = vsel %vm449_vm1, %v490_v60, %v491_v5  ;;  %v494_v52 = vsel %vm449_vm1, %v491_v5, %v493_v22  ;;  %v507_v20 = vsel %vm449_vm1, %v505_v33, %v506_v30  ;;  %v509_v21 = vsel %vm449_vm1, %v506_v30, %v508_v6 }
  0x3f   : > { %v502_v38 = vsel %vm449_vm1, %v500_v7, %v501_v37  ;;  %v504_v54 = vsel %vm449_vm1, %v501_v37, %v503_v62  ;;  %v510_v55 = vrot.slane %v3881_v16, 2  ;;  %v517_v26 = vsel %vm449_vm1, %v515_v8, %v516_v23 }
  0x40   : > { %1931 = vrot.lane.b32.xlu0 %v2895_v13, %s2519_s18  ;;  %v519_v51 = vsel %vm449_vm1, %v516_v23, %v518_v45  ;;  %v511_v60 = vrot.slane %v3882_v3, 2  ;;  %v513_v5 = vrot.slane %v2778_v35, 2  ;;  %v2947_v22 = vpack.i.bf16 %v499_v57, %v497_v39 }
  0x41   : > { %v2949_v33 = vpack.i.bf16 %v494_v52, %v492_v4  ;;  %v2951_v30 = vpack.i.bf16 %v509_v21, %v507_v20  ;;  %v2953_v6 = vpack.i.bf16 %v504_v54, %v502_v38  ;;  %v2957_v7 = vpack.i.bf16 %v519_v51, %v517_v26  ;;  %v3883_v4 = vld [vmem:[#allocation14_spill] sm:$0xff] }
  0x42   : > { %1946 = vrot.lane.b32.xlu1 %v2897_v48, %s2519_s18  ;;  %v525_v37 = vrot.slane %v2785_v46, 2  ;;  %v526_v35 = vrot.slane %v2788_v59, 2  ;;  %v512_v62 = vsel %vm449_vm1, %v510_v55, %v511_v60  ;;  %v514_v8 = vsel %vm449_vm1, %v511_v60, %v513_v5 }
  0x43   : > { %v528_v20 = vrot.slane %v2798_v14, 2  ;;  %v520_v23 = vrot.slane %v3883_v4, 2  ;;  %v521_v45 = vrot.slane %v2804_v19, 2  ;;  %v523_v39 = vrot.slane %v2810_v58, 2 }
  0x44   : > { %1941 = vrot.lane.b32.xlu0 %v2900_v44, %s2519_s18  ;;  %v2973_v57 = vpack.i.bf16 %v514_v8, %v512_v62  ;;  %v527_v52 = vsel %vm449_vm1, %v525_v37, %v526_v35  ;;  %v2005_v55 = vpack.i.bf16 %v2571_v1, %v2568_v0  ;;  %v2000_v26 = vpack.i.bf16 %v2606_v18, %v2603_v17 }
  0x45   : > { %v529_v21 = vsel %vm449_vm1, %v526_v35, %v528_v20  ;;  %v522_v14 = vsel %vm449_vm1, %v520_v23, %v521_v45  ;;  %v524_v38 = vsel %vm449_vm1, %v521_v45, %v523_v39  ;;  %v2015_v51 = vpack.i.bf16 %v2638_v36, %v2630_v31 }
  0x46   : > { %1956 = vrot.lane.b32.xlu1 %v2926_v34, %s2519_s18  ;;  %v2983_v58 = vpack.i.bf16 %v529_v21, %v527_v52  ;;  %v2987_v54 = vpack.i.bf16 %v524_v38, %v522_v14  ;;  %v2010_v60 = vpack.i.bf16 %v2594_v12, %v2591_v11  ;;  %v3006_v0 = vpack.i.bf16 %v2666_v50, %v2663_v49  ;;  %v3889_v38 = vld [vmem:[#allocation6_spill] sm:$0xff] }
  0x47   : > { %v3011_v1 = vpack.i.bf16 %v2620_v25, %v2617_v24  ;;  %v2035_v17 = vpack.i.bf16 %v2700_v10, %v2697_v9  ;;  %v2030_v18 = vpack.i.bf16 %v2651_v43, %v2648_v42  ;;  %v2045_v5 = vpack.i.bf16 %v2736_v41, %v2733_v40  ;;  %v3884_v10 = vld [vmem:[#allocation12_spill] sm:$0xff] }
  0x48   : > { %1951 = vrot.lane.b32.xlu0 %v2928_v2, %s2519_s18  ;;  %v2040_v37 = vpack.i.bf16 %v2687_v61, %v2677_v56  ;;  %v2050_v9 = vpack.i.bf16 %v2720_v32, %v2717_v29  ;;  %v3885_v40 = vld [vmem:[#allocation4_spill] sm:$0xff]  ;;  %v3886_v56 = vld [vmem:[#allocation2_spill] sm:$0xff]  ;;  %v2175_v23 = vpack.i.bf16 %v3882_v3, %v3881_v16 }
  0x4a   : > { %1966 = vrot.lane.b32.xlu1 %v2947_v22, %s2519_s18 }
  0x4c   : > { %1961 = vrot.lane.b32.xlu0 %v2949_v33, %s2519_s18 }
  0x4e   : > { %1976 = vrot.lane.b32.xlu1 %v2951_v30, %s2519_s18 }
  0x50   : > { %1971 = vrot.lane.b32.xlu0 %v2953_v6, %s2519_s18 }
  0x52   : > { %1986 = vrot.lane.b32.xlu1 %v2957_v7, %s2519_s18 }
  0x54   : > { %1981 = vrot.lane.b32.xlu0 %v2973_v57, %s2519_s18 }
  0x56   : > { %1996 = vrot.lane.b32.xlu1 %v2983_v58, %s2519_s18 }
  0x58   : > { %1991 = vrot.lane.b32.xlu0 %v2987_v54, %s2519_s18 }
  0x5a   : > { %2006 = vrot.lane.b32.xlu1 %v2005_v55, %s2520_s19 }
  0x5c   : > { %2001 = vrot.lane.b32.xlu0 %v2000_v26, %s2520_s19 }
  0x5e   : > { %2016 = vrot.lane.b32.xlu1 %v2015_v51, %s2520_s19 }
  0x60   : > { %2011 = vrot.lane.b32.xlu0 %v2010_v60, %s2520_s19 }
  0x62   : > { %2026 = vrot.lane.b32.xlu1 %v3006_v0, %s2520_s19 }
  0x64   : > { %2021 = vrot.lane.b32.xlu0 %v3011_v1, %s2520_s19 }
  0x66   : > { %2036 = vrot.lane.b32.xlu1 %v2035_v17, %s2520_s19 }
  0x68   : > { %2031 = vrot.lane.b32.xlu0 %v2030_v18, %s2520_s19 }
  0x6a   : > { %2046 = vrot.lane.b32.xlu1 %v2045_v5, %s2520_s19 }
  0x6c   : > { %2041 = vrot.lane.b32.xlu0 %v2040_v37, %s2520_s19 }
  0x6e   : > { %2056 = vrot.lane.b32.xlu1 %v3884_v10, %s2521_s20 }
  0x70   : > { %2051 = vrot.lane.b32.xlu0 %v2050_v9, %s2520_s19 }
  0x72   : > { %2066 = vrot.lane.b32.xlu1 %v2947_v22, %s2522_s21 }
  0x74   : > { %2061 = vrot.lane.b32.xlu0 %v3885_v40, %s2521_s20 }
  0x76   : > { %2076 = vrot.lane.b32.xlu1 %v2045_v5, %s2523_s22 }
  0x78   : > { %2071 = vrot.lane.b32.xlu0 %v2869_v47, %s2522_s21 }
  0x7a   : > { %2086 = vrot.lane.b32.xlu1 %v2816_v15, %s2524_s23 }
  0x7c   : > { %2081 = vrot.lane.b32.xlu0 %v2005_v55, %s2523_s22 }
  0x7e   : > { %2096 = vrot.lane.b32.xlu1 %v2953_v6, %s2525_s24 }
  0x80   : > { %2091 = vrot.lane.b32.xlu0 %v3886_v56, %s2524_s23 }
  0x82   : > { %2106 = vrot.lane.b32.xlu1 %v2816_v15, %s2521_s20  ;;  %v3887_v15 = vld [vmem:[#allocation15_spill] sm:$0xff] }
  0x84   : > { %2101 = vrot.lane.b32.xlu0 %v2895_v13, %s2525_s24 }
  0x86   : > { %2116 = vrot.lane.b32.xlu1 %v2953_v6, %s2522_s21  ;;  %v3888_v6 = vld [vmem:[#allocation3_spill] sm:$0xff] }
  0x88   : > { %2111 = vrot.lane.b32.xlu0 %v3886_v56, %s2521_s20 }
  0x8a   : > { %2126 = vrot.lane.b32.xlu1 %v2050_v9, %s2523_s22 }
  0x8c   : > { %2121 = vrot.lane.b32.xlu0 %v2895_v13, %s2522_s21  ;;  %v3059_v61 = vpop.permute.xlu1 %1851 }
  0x8e   : > { %v3061_v41 = vpop.permute.xlu0 %1841  ;;  %2136 = vrot.lane.b32.xlu1 %v3887_v15, %s2524_s23 }
  0x90   : > { %2131 = vrot.lane.b32.xlu0 %v2010_v60, %s2523_s22  ;;  %v1857_v47 = vpop.permute.xlu1 %1856 }
  0x91   : > { %v1858_v60 = vunpack.i.l.bf16 %v1857_v47 }
  0x92   : > { %v3066_v35 = vpop.permute.xlu0 %1846  ;;  %2146 = vrot.lane.b32.xlu1 %v2951_v30, %s2525_s24 }
  0x93   : > { %v1235_v40 = vsel %vm1228_vm2, %v2591_v11, %v1858_v60 }
  0x94   : > { %2141 = vrot.lane.b32.xlu0 %v3888_v6, %s2524_s23  ;;  %v1867_v62 = vpop.permute.xlu1 %1866 }
  0x95   : > { %v1869_v56 = vunpack.i.h.bf16 %v1867_v62 }
  0x96   : > { %v3072_v13 = vpop.permute.xlu0 %1861  ;;  %2156 = vrot.lane.b32.xlu1 %v3887_v15, %s2521_s20  ;;  %v1868_v15 = vunpack.i.l.bf16 %v1867_v62  ;;  %v2230_v62 = vpack.i.bf16 %v2755_v63, %v2745_v53 }
  0x98   : > { %2151 = vrot.lane.b32.xlu0 %v2889_v27, %s2525_s24  ;;  %v3078_v8 = vpop.permute.xlu1 %1876  ;;  %v1239_v60 = vsel %vm1228_vm2, %v2617_v24, %v1868_v15 }
  0x9a   : > { %v3080_v20 = vpop.permute.xlu0 %1871  ;;  %2166 = vrot.lane.b32.xlu1 %v2951_v30, %s2522_s21 }
  0x9c   : > { %2161 = vrot.lane.b32.xlu0 %v3888_v6, %s2521_s20  ;;  %v3088_v45 = vpop.permute.xlu1 %1886 }
  0x9e   : > { %v3090_v39 = vpop.permute.xlu0 %1881  ;;  %2176 = vrot.lane.b32.xlu1 %v2175_v23, %s2523_s22 }
  0xa0   : > { %2171 = vrot.lane.b32.xlu0 %v2889_v27, %s2522_s21  ;;  %v3095_v52 = vpop.permute.xlu1 %1896 }
  0xa2   : > { %v3097_v21 = vpop.permute.xlu0 %1891  ;;  %2186 = vrot.lane.b32.xlu1 %v2844_v28, %s2524_s23 }
  0xa4   : > { %2181 = vrot.lane.b32.xlu0 %v2015_v51, %s2523_s22  ;;  %v3102_v30 = vpop.permute.xlu1 %1906  ;;  %v1859_v51 = vunpack.i.h.bf16 %v1857_v47 }
  0xa6   : > { %v3104_v14 = vpop.permute.xlu0 %1901  ;;  %2196 = vrot.lane.b32.xlu1 %v2973_v57, %s2525_s24  ;;  %v1236_v9 = vsel %vm1228_vm2, %v2594_v12, %v1859_v51  ;;  %v1863_v12 = vunpack.i.l.bf16 %v3072_v13 }
  0xa8   : > { %2191 = vrot.lane.b32.xlu0 %v3889_v38, %s2524_s23  ;;  %v3110_v27 = vpop.permute.xlu1 %1916  ;;  %v1237_v24 = vsel %vm1228_vm2, %v2630_v31, %v1863_v12 }
  0xaa   : > { %v3112_v55 = vpop.permute.xlu0 %1911  ;;  %2206 = vrot.lane.b32.xlu1 %v2175_v23, %s2520_s19  ;;  %v1864_v23 = vunpack.i.h.bf16 %v3072_v13 }
  0xac   : > { %2201 = vrot.lane.b32.xlu0 %v2900_v44, %s2525_s24  ;;  %v3117_v26 = vpop.permute.xlu1 %1926 }
  0xae   : > { %v3119_v17 = vpop.permute.xlu0 %1921  ;;  %2216 = vrot.lane.b32.xlu1 %v3889_v38, %s2521_s20 }
  0xb0   : > { %2211 = vrot.lane.b32.xlu0 %v2844_v28, %s2521_s20  ;;  %v1937_v18 = vpop.permute.xlu1 %1936 }
  0xb1   : > { %v1939_v5 = vunpack.i.h.bf16 %v1937_v18  ;;  %v1938_v37 = vunpack.i.l.bf16 %v1937_v18  ;;  %v1879_v18 = vunpack.i.h.bf16 %v3078_v8 }
  0xb2   : > { %v3129_v47 = vpop.permute.xlu0 %1931  ;;  %2226 = vrot.lane.b32.xlu1 %v2900_v44, %s2522_s21  ;;  %v1240_v44 = vsel %vm1228_vm2, %v2620_v25, %v1869_v56  ;;  %v1238_v25 = vsel %vm1228_vm2, %v2638_v36, %v1864_v23  ;;  %v1873_v56 = vunpack.i.l.bf16 %v3080_v20 }
  0xb3   : > { %v3134_v6 = vsel %vm1261_vm3, %v1236_v9, %v1939_v5  ;;  %v3137_v28 = vsel %vm1261_vm3, %v1235_v40, %v1938_v37  ;;  %v1878_v5 = vunpack.i.l.bf16 %v3078_v8  ;;  %v1874_v8 = vunpack.i.h.bf16 %v3080_v20  ;;  %v3890_v20 = vld [vmem:[#allocation5_spill] sm:$0xff] }
  0xb4   : > { %2221 = vrot.lane.b32.xlu0 %v2973_v57, %s2522_s21  ;;  %v1947_v11 = vpop.permute.xlu1 %1946  ;;  %v1244_v36 = vsel %vm1228_vm2, %v2651_v43, %v1879_v18  ;;  %v1241_v43 = vsel %vm1228_vm2, %v2663_v49, %v1873_v56 }
  0xb5   : > { %v1949_v38 = vunpack.i.h.bf16 %v1947_v11  ;;  %v1948_v51 = vunpack.i.l.bf16 %v1947_v11  ;;  %v1243_v31 = vsel %vm1228_vm2, %v2648_v42, %v1878_v5  ;;  %v3891_v42 = vld [vmem:[#allocation16_spill] sm:$0xff] }
  0xb6   : > { %v1942_v13 = vpop.permute.xlu0 %1941  ;;  %2236 = vrot.lane.b32.xlu1 %v3011_v1, %s2523_s22 }
  0xb7   : > { %v3154_v57 = vsel %vm1261_vm3, %v1240_v44, %v1949_v38  ;;  %v3157_v37 = vsel %vm1261_vm3, %v1239_v60, %v1948_v51  ;;  %v1944_v9 = vunpack.i.h.bf16 %v1942_v13  ;;  %v1943_v40 = vunpack.i.l.bf16 %v1942_v13 }
  0xb8   : > { %2231 = vrot.lane.b32.xlu0 %v2230_v62, %s2523_s22  ;;  %v1957_v1 = vpop.permute.xlu1 %1956 }
  0xb9   : > { %v3167_v15 = vsel %vm1261_vm3, %v1237_v24, %v1943_v40  ;;  %v3170_v11 = vsel %vm1261_vm3, %v1238_v25, %v1944_v9  ;;  %v1959_v38 = vunpack.i.h.bf16 %v1957_v1  ;;  %v1958_v51 = vunpack.i.l.bf16 %v1957_v1 }
  0xba   : > { %v1952_v23 = vpop.permute.xlu0 %1951  ;;  %2246 = vrot.lane.b32.xlu1 %v3890_v20, %s2524_s23  ;;  %v1242_v9 = vsel %vm1228_vm2, %v2666_v50, %v1874_v8  ;;  %v1899_v25 = vunpack.i.h.bf16 %v3095_v52  ;;  %v1898_v24 = vunpack.i.l.bf16 %v3095_v52  ;;  %v1908_v52 = vunpack.i.l.bf16 %v3102_v30 }
  0xbb   : > { %v3179_v12 = vsel %vm1261_vm3, %v1244_v36, %v1959_v38  ;;  %v3182_v44 = vsel %vm1261_vm3, %v1243_v31, %v1958_v51  ;;  %v1954_v60 = vunpack.i.h.bf16 %v1952_v23  ;;  %v1953_v13 = vunpack.i.l.bf16 %v1952_v23 }
  0xbc   : > { %2241 = vrot.lane.b32.xlu0 %v3891_v42, %s2524_s23  ;;  %v3190_v18 = vpop.permute.xlu1 %1966  ;;  %v1252_v56 = vsel %vm1228_vm2, %v2720_v32, %v1899_v25  ;;  %v1251_v38 = vsel %vm1228_vm2, %v2717_v29, %v1898_v24  ;;  %v1909_v51 = vunpack.i.h.bf16 %v3102_v30  ;;  %v1904_v32 = vunpack.i.h.bf16 %v3104_v14 }
  0xbd   : > { %v3193_v5 = vsel %vm1261_vm3, %v1241_v43, %v1953_v13  ;;  %v3196_v40 = vsel %vm1261_vm3, %v1242_v9, %v1954_v60  ;;  %v1903_v60 = vunpack.i.l.bf16 %v3104_v14  ;;  %v2285_v9 = vpack.i.bf16 %v2804_v19, %v3883_v4 }
  0xbe   : > { %v3200_v1 = vpop.permute.xlu0 %1961  ;;  %2256 = vrot.lane.b32.xlu1 %v2897_v48, %s2525_s24  ;;  %v1256_v43 = vsel %vm1228_vm2, %v2755_v63, %v1909_v51  ;;  %v1919_v25 = vunpack.i.h.bf16 %v3110_v27  ;;  %v1918_v24 = vunpack.i.l.bf16 %v3110_v27  ;;  %v1254_v63 = vsel %vm1228_vm2, %v3882_v3, %v1904_v32 }
  0xbf   : > { %v1914_v27 = vunpack.i.h.bf16 %v3112_v55 }
  0xc0   : > { %2251 = vrot.lane.b32.xlu0 %v2957_v7, %s2525_s24  ;;  %v1977_v49 = vpop.permute.xlu1 %1976  ;;  %v1260_v3 = vsel %vm1228_vm2, %v2788_v59, %v1919_v25 }
  0xc1   : > { %v1979_v50 = vunpack.i.h.bf16 %v1977_v49  ;;  %v1978_v8 = vunpack.i.l.bf16 %v1977_v49 }
  0xc2   : > { %v3212_v36 = vpop.permute.xlu0 %1971  ;;  %2266 = vrot.lane.b32.xlu1 %v3891_v42, %s2521_s20  ;;  %v1255_v42 = vsel %vm1228_vm2, %v2745_v53, %v1908_v52  ;;  %v1253_v53 = vsel %vm1228_vm2, %v3881_v16, %v1903_v60  ;;  %v1259_v16 = vsel %vm1228_vm2, %v2785_v46, %v1918_v24 }
  0xc3   : > { %v3217_v31 = vsel %vm1261_vm3, %v1252_v56, %v1979_v50  ;;  %v3220_v23 = vsel %vm1261_vm3, %v1251_v38, %v1978_v8  ;;  %v1913_v56 = vunpack.i.l.bf16 %v3112_v55 }
  0xc4   : > { %2261 = vrot.lane.b32.xlu0 %v2230_v62, %s2520_s19  ;;  %v1987_v29 = vpop.permute.xlu1 %1986 }
  0xc5   : > { %v1989_v13 = vunpack.i.h.bf16 %v1987_v29  ;;  %v1988_v30 = vunpack.i.l.bf16 %v1987_v29 }
  0xc6   : > { %v1982_v49 = vpop.permute.xlu0 %1981  ;;  %2276 = vrot.lane.b32.xlu1 %v2957_v7, %s2522_s21 }
  0xc7   : > { %v3236_v14 = vsel %vm1261_vm3, %v1256_v43, %v1989_v13  ;;  %v3239_v62 = vsel %vm1261_vm3, %v1255_v42, %v1988_v30  ;;  %v1984_v50 = vunpack.i.h.bf16 %v1982_v49  ;;  %v1983_v8 = vunpack.i.l.bf16 %v1982_v49 }
  0xc8   : > { %3892 = vst [vmem:[#allocation9_spill] sm:$0xff] %v3236_v14  ;;  %2271 = vrot.lane.b32.xlu0 %v3890_v20, %s2521_s20  ;;  %v1997_v7 = vpop.permute.xlu1 %1996  ;;  %v1258_v30 = vsel %vm1228_vm2, %v2804_v19, %v1914_v27  ;;  %v1257_v43 = vsel %vm1228_vm2, %v3883_v4, %v1913_v56  ;;  %v3898_v27 = vld [vmem:[#allocation8_spill] sm:$0xff] }
  0xc9   : > { %v3250_v38 = vsel %vm1261_vm3, %v1253_v53, %v1983_v8  ;;  %v3253_v51 = vsel %vm1261_vm3, %v1254_v63, %v1984_v50  ;;  %v1999_v52 = vunpack.i.h.bf16 %v1997_v7  ;;  %v1998_v29 = vunpack.i.l.bf16 %v1997_v7  ;;  %v3897_v50 = vld [vmem:[#allocation18_spill] sm:$0xff] }
  0xca   : > { %v1992_v32 = vpop.permute.xlu0 %1991  ;;  %2286 = vrot.lane.b32.xlu1 %v2285_v9, %s2523_s22 }
  0xcb   : > { %v3261_v55 = vsel %vm1261_vm3, %v1260_v3, %v1999_v52  ;;  %v3264_v20 = vsel %vm1261_vm3, %v1259_v16, %v1998_v29  ;;  %v1994_v60 = vunpack.i.h.bf16 %v1992_v32  ;;  %v1993_v13 = vunpack.i.l.bf16 %v1992_v32 }
  0xcc   : > { %3893 = vst [vmem:[#allocation10_spill] sm:$0xff] %v3261_v55  ;;  %3894 = vst [vmem:[#allocation11_spill] sm:$0xff] %v3264_v20  ;;  %2281 = vrot.lane.b32.xlu0 %v2897_v48, %s2522_s21  ;;  %v3272_v42 = vpop.permute.xlu1 %2006  ;;  %v2483_v55 = vld [vmem:[%s2565_s16] sm:$0xff] }
  0xcd   : > { %v3275_v25 = vsel %vm1261_vm3, %v1257_v43, %v1993_v13  ;;  %v3278_v24 = vsel %vm1261_vm3, %v1258_v30, %v1994_v60 }
  0xce   : > { %3895 = vst [vmem:[#allocation14_spill] sm:$0xff] %v3275_v25  ;;  %3896 = vst [vmem:[#allocation12_spill] sm:$0xff] %v3278_v24  ;;  %v3280_v49 = vpop.permute.xlu0 %2001  ;;  %2296 = vrot.lane.b32.xlu1 %v3897_v50, %s2524_s23 }
  0xd0   : > { %2291 = vrot.lane.b32.xlu0 %v3006_v0, %s2523_s22  ;;  %v2017_v19 = vpop.permute.xlu1 %2016 }
  0xd1   : > { %v2019_v4 = vunpack.i.h.bf16 %v2017_v19  ;;  %v2018_v8 = vunpack.i.l.bf16 %v2017_v19 }
  0xd2   : > { %v3286_v48 = vpop.permute.xlu0 %2011  ;;  %2306 = vrot.lane.b32.xlu1 %v2987_v54, %s2525_s24 }
  0xd3   : > { %v3292_v63 = vsel %vm1294_vm4, %v3137_v28, %v2018_v8  ;;  %v3296_v53 = vsel %vm1294_vm4, %v3134_v6, %v2019_v4  ;;  %v2481_v8 = vld [vmem:[%s2565_s16 + $0xb0] sm:$0xff] }
  0xd4   : > { %2301 = vrot.lane.b32.xlu0 %v3898_v27, %s2524_s23  ;;  %v2027_v0 = vpop.permute.xlu1 %2026 }
  0xd5   : > { %v2029_v56 = vunpack.i.h.bf16 %v2027_v0  ;;  %v2028_v7 = vunpack.i.l.bf16 %v2027_v0  ;;  %v218_v0 = vld [vmem:[%s2565_s16 + $0x180] sm:$0xff] }
  0xd6   : > { %v2022_v52 = vpop.permute.xlu0 %2021  ;;  %2316 = vrot.lane.b32.xlu1 %v2285_v9, %s2520_s19 }
  0xd7   : > { %v3303_v29 = vsel %vm1294_vm4, %v3157_v37, %v2028_v7  ;;  %v3307_v28 = vsel %vm1294_vm4, %v3154_v57, %v2029_v56  ;;  %v2024_v3 = vunpack.i.h.bf16 %v2022_v52  ;;  %v2023_v6 = vunpack.i.l.bf16 %v2022_v52  ;;  %v220_v56 = vld [vmem:[%s2565_s16 + $0x190] sm:$0x3] }
  0xd8   : > { %3899 = vst [vmem:[#allocation4_spill] sm:$0xff] %v3303_v29  ;;  %3900 = vst [vmem:[#allocation2_spill] sm:$0xff] %v3307_v28  ;;  %2311 = vrot.lane.b32.xlu0 %v2928_v2, %s2525_s24  ;;  %v2037_v16 = vpop.permute.xlu1 %2036  ;;  %v725_v7 = vrot.slane %v218_v0, 1 }
  0xd9   : > { %v3313_v32 = vsel %vm1294_vm4, %v3167_v15, %v2023_v6  ;;  %v3317_v9 = vsel %vm1294_vm4, %v3170_v11, %v2024_v3  ;;  %v2039_v37 = vunpack.i.h.bf16 %v2037_v16  ;;  %v2038_v60 = vunpack.i.l.bf16 %v2037_v16 }
  0xda   : > { %v2032_v57 = vpop.permute.xlu0 %2031  ;;  %2326 = vrot.lane.b32.xlu1 %v3898_v27, %s2521_s20  ;;  %v728_v3 = vrot.slane %v220_v56, 1 }
  0xdb   : > { %v3323_v13 = vsel %vm1294_vm4, %v3182_v44, %v2038_v60  ;;  %v3327_v15 = vsel %vm1294_vm4, %v3179_v12, %v2039_v37  ;;  %v2034_v11 = vunpack.i.h.bf16 %v2032_v57  ;;  %v2033_v30 = vunpack.i.l.bf16 %v2032_v57  ;;  %v2480_v12 = vld [vmem:[%s2565_s16 + $0xa8] sm:$0xff] }
  0xdc   : > { %3901 = vst [vmem:[#allocation15_spill] sm:$0xff] %v3323_v13  ;;  %3902 = vst [vmem:[#allocation3_spill] sm:$0xff] %v3327_v15  ;;  %2321 = vrot.lane.b32.xlu0 %v3897_v50, %s2521_s20  ;;  %v3331_v43 = vpop.permute.xlu1 %2046  ;;  %v2345_v27 = vpack.i.bf16 %v2481_v8, %v2480_v12  ;;  %v219_v50 = vld [vmem:[%s2565_s16 + $0x188] sm:$0xff]  ;;  %v1844_v37 = vunpack.i.h.bf16 %v3061_v41  ;;  %v829_v60 = vrot.slane %v220_v56, 2  ;;  %v1843_v57 = vunpack.i.l.bf16 %v3061_v41 }
  0xdd   : > { %v3335_v19 = vsel %vm1294_vm4, %v3193_v5, %v2033_v30  ;;  %v3339_v4 = vsel %vm1294_vm4, %v3196_v40, %v2034_v11  ;;  %v3356_v40 = vpack.i.bf16 %v2788_v59, %v2785_v46  ;;  %v726_v52 = vrot.slane %v219_v50, 1  ;;  %v3905_v12 = vld [vmem:[#allocation7_spill] sm:$0xff] }
  0xde   : > { %3903 = vst [vmem:[#allocation6_spill] sm:$0xff] %v3335_v19  ;;  %3904 = vst [vmem:[#allocation5_spill] sm:$0xff] %v3339_v4  ;;  %v3341_v44 = vpop.permute.xlu0 %2041  ;;  %2336 = vrot.lane.b32.xlu1 %v2928_v2, %s2522_s21  ;;  %v827_v16 = vrot.slane %v219_v50, 2  ;;  %v1884_v11 = vunpack.i.h.bf16 %v3090_v39  ;;  %v1883_v8 = vunpack.i.l.bf16 %v3090_v39  ;;  %v1924_v56 = vunpack.i.h.bf16 %v3119_v17  ;;  %v2482_v15 = vld [vmem:[%s2565_s16 + $0x8] sm:$0xff] }
  0xdf   : > { %v727_v46 = vsel %vm272_vm0, %v725_v7, %v726_v52  ;;  %v729_v59 = vsel %vm272_vm0, %v726_v52, %v728_v3  ;;  %v1923_v41 = vunpack.i.l.bf16 %v3119_v17  ;;  %v3906_v7 = vld [vmem:[#allocation17_spill] sm:$0xff]  ;;  %v1963_v13 = vunpack.i.l.bf16 %v3200_v1  ;;  %v3396_v4 = vld [vmem:[%s2565_s16 + $0xc8] sm:$0xff] }
  0xe0   : > { %2331 = vrot.lane.b32.xlu0 %v2987_v54, %s2522_s21  ;;  %v3352_v5 = vpop.permute.xlu1 %2056  ;;  %v826_v54 = vrot.slane %v218_v0, 2  ;;  %v3381_v3 = vpack.i.bf16 %v729_v59, %v727_v46  ;;  %v3391_v17 = vsel %vm449_vm1, %v827_v16, %v829_v60  ;;  %v1229_v20 = vsel %vm1228_vm2, %v2483_v55, %v1843_v57 }
  0xe1   : > { %v1246_v46 = vsel %vm1228_vm2, %v3396_v4, %v1884_v11  ;;  %v2043_v59 = vunpack.i.l.bf16 %v3341_v44  ;;  %v2003_v55 = vunpack.i.l.bf16 %v3280_v49  ;;  %v2058_v60 = vunpack.i.l.bf16 %v3352_v5 }
  0xe2   : > { %v3358_v6 = vpop.permute.xlu0 %2051  ;;  %2346 = vrot.lane.b32.xlu1 %v2345_v27, %s2523_s22  ;;  %v3375_v27 = vpack.i.bf16 %v219_v50, %v218_v0  ;;  %v3384_v39 = vsel %vm449_vm1, %v826_v54, %v827_v16  ;;  %v1230_v0 = vsel %vm1228_vm2, %v2482_v15, %v1844_v37  ;;  %v1964_v50 = vunpack.i.h.bf16 %v3200_v1  ;;  %v3405_v1 = vld [vmem:[%s2565_s16 + $0xc0] sm:$0xff] }
  0xe3   : > { %v2044_v54 = vunpack.i.h.bf16 %v3341_v44  ;;  %v1245_v16 = vsel %vm1228_vm2, %v3405_v1, %v1883_v8  ;;  %v2059_v37 = vunpack.i.h.bf16 %v3352_v5  ;;  %v1262_v57 = vsel %vm1261_vm3, %v1229_v20, %v1923_v41 }
  0xe4   : > { %2341 = vrot.lane.b32.xlu0 %v3356_v40, %s2523_s22  ;;  %v3363_v2 = vpop.permute.xlu1 %2066  ;;  %v1263_v11 = vsel %vm1261_vm3, %v1230_v0, %v1924_v56  ;;  %v1278_v8 = vsel %vm1261_vm3, %v1245_v16, %v1963_v13  ;;  %v1279_v25 = vsel %vm1261_vm3, %v1246_v46, %v1964_v50  ;;  %v1295_v14 = vsel %vm1294_vm4, %v1262_v57, %v2003_v55 }
  0xe5   : > { %v2069_v44 = vunpack.i.h.bf16 %v3363_v2  ;;  %v2068_v19 = vunpack.i.l.bf16 %v3363_v2  ;;  %v1311_v5 = vsel %vm1294_vm4, %v1278_v8, %v2043_v59  ;;  %v1312_v20 = vsel %vm1294_vm4, %v1279_v25, %v2044_v54 }
  0xe6   : > { %v3370_v30 = vpop.permute.xlu0 %2061  ;;  %2356 = vrot.lane.b32.xlu1 %v3905_v12, %s2524_s23  ;;  %v2004_v2 = vunpack.i.h.bf16 %v3280_v49  ;;  %v1344_v13 = vsel %vm1327_vm5, %v1311_v5, %v2058_v60  ;;  %v1345_v50 = vsel %vm1327_vm5, %v1312_v20, %v2059_v37 }
  0xe7   : > { %v1378_v46 = vsel %vm1360_vm6, %v1345_v50, %v2069_v44  ;;  %v2064_v25 = vunpack.i.h.bf16 %v3370_v30 }
  0xe8   : > { %2351 = vrot.lane.b32.xlu0 %v3906_v7, %s2524_s23  ;;  %v2077_v52 = vpop.permute.xlu1 %2076 }
  0xe9   : > { %v2079_v28 = vunpack.i.h.bf16 %v2077_v52  ;;  %v2078_v29 = vunpack.i.l.bf16 %v2077_v52  ;;  %v1377_v52 = vsel %vm1360_vm6, %v1344_v13, %v2068_v19  ;;  %v3459_v13 = vpack.i.bf16 %v3391_v17, %v3384_v39 }
  0xea   : > { %v2072_v15 = vpop.permute.xlu0 %2071  ;;  %2366 = vrot.lane.b32.xlu1 %v2926_v34, %s2525_s24 }
  0xeb   : > { %v1410_v49 = vsel %vm1393_vm7, %v1377_v52, %v2078_v29  ;;  %v1411_v54 = vsel %vm1393_vm7, %v1378_v46, %v2079_v28  ;;  %v2074_v55 = vunpack.i.h.bf16 %v2072_v15  ;;  %v2073_v37 = vunpack.i.l.bf16 %v2072_v15 }
  0xec   : > { %2361 = vrot.lane.b32.xlu0 %v2983_v58, %s2525_s24  ;;  %v2087_v24 = vpop.permute.xlu1 %2086  ;;  %v1296_v15 = vsel %vm1294_vm4, %v1263_v11, %v2004_v2  ;;  %v1849_v46 = vunpack.i.h.bf16 %v3066_v35 }
  0xed   : > { %v2089_v41 = vunpack.i.h.bf16 %v2087_v24  ;;  %v2088_v56 = vunpack.i.l.bf16 %v2087_v24  ;;  %v2063_v24 = vunpack.i.l.bf16 %v3370_v30 }
  0xee   : > { %v2082_v0 = vpop.permute.xlu0 %2081  ;;  %2376 = vrot.lane.b32.xlu1 %v3906_v7, %s2521_s20 }
  0xef   : > { %v1443_v19 = vsel %vm1426_vm8, %v1410_v49, %v2088_v56  ;;  %v1444_v30 = vsel %vm1426_vm8, %v1411_v54, %v2089_v41  ;;  %v2084_v57 = vunpack.i.h.bf16 %v2082_v0  ;;  %v2083_v44 = vunpack.i.l.bf16 %v2082_v0 }
  0xf0   : > { %2371 = vrot.lane.b32.xlu0 %v3356_v40, %s2520_s19  ;;  %v2097_v7 = vpop.permute.xlu1 %2096  ;;  %v1328_v41 = vsel %vm1327_vm5, %v1295_v14, %v2063_v24  ;;  %v1329_v56 = vsel %vm1327_vm5, %v1296_v15, %v2064_v25  ;;  %v2400_v0 = vpack.i.bf16 %v3396_v4, %v3405_v1  ;;  %v1848_v49 = vunpack.i.l.bf16 %v3066_v35 }
  0xf1   : > { %v2099_v59 = vunpack.i.h.bf16 %v2097_v7  ;;  %v2098_v16 = vunpack.i.l.bf16 %v2097_v7  ;;  %v1361_v11 = vsel %vm1360_vm6, %v1328_v41, %v2073_v37  ;;  %v1362_v2 = vsel %vm1360_vm6, %v1329_v56, %v2074_v55  ;;  %v3477_v7 = vld [vmem:[%s2565_s16 + $0x1a0] sm:$0xff] }
  0xf2   : > { %v2092_v60 = vpop.permute.xlu0 %2091  ;;  %2386 = vrot.lane.b32.xlu1 %v2983_v58, %s2522_s21  ;;  %v1394_v14 = vsel %vm1393_vm7, %v1361_v11, %v2083_v44  ;;  %v1395_v4 = vsel %vm1393_vm7, %v1362_v2, %v2084_v57  ;;  %v1889_v54 = vunpack.i.h.bf16 %v3088_v45  ;;  %v1854_v55 = vunpack.i.h.bf16 %v3059_v61  ;;  %v3499_v57 = vld [vmem:[%s2565_s16 + $0xe0] sm:$0xff] }
  0xf3   : > { %v1476_v40 = vsel %vm1459_vm9, %v1443_v19, %v2098_v16  ;;  %v1477_v29 = vsel %vm1459_vm9, %v1444_v30, %v2099_v59  ;;  %v2094_v8 = vunpack.i.h.bf16 %v2092_v60  ;;  %v2093_v58 = vunpack.i.l.bf16 %v2092_v60  ;;  %v3486_v16 = vld [vmem:[%s2565_s16 + $0x198] sm:$0xff] }
  0xf4   : > { %2381 = vrot.lane.b32.xlu0 %v3905_v12, %s2521_s20  ;;  %v3451_v5 = vpop.permute.xlu1 %2106  ;;  %v1759_v20 = vpack.c.bf16 %v1477_v29, %v1476_v40  ;;  %v1888_v37 = vunpack.i.l.bf16 %v3088_v45  ;;  %v1929_v60 = vunpack.i.h.bf16 %v3117_v26  ;;  %v1928_v35 = vunpack.i.l.bf16 %v3117_v26  ;;  %v3496_v30 = vld [vmem:[%s2565_s16 + $0xd8] sm:$0xff]  ;;  %v2488_v45 = vld [vmem:[%s2565_s16 + $0x20] sm:$0xff] }
  0xf5   : > { %v1427_v17 = vsel %vm1426_vm8, %v1394_v14, %v2093_v58  ;;  %v1428_v50 = vsel %vm1426_vm8, %v1395_v4, %v2094_v8  ;;  %v2455_v44 = vpack.i.bf16 %v3499_v57, %v3496_v30  ;;  %v1027_v40 = vrot.slane %v3477_v7, 1  ;;  %v2489_v58 = vld [vmem:[%s2565_s16 + $0x18] sm:$0xff] }
  0xf6   : > { %v2102_v12 = vpop.permute.xlu0 %2101  ;;  %2396 = vrot.lane.b32.xlu1 %v3375_v27, %s2523_s22  ;;  %1761 = vmatprep.subr.msk.bf16.mxu0 %vm3444_vm11, %v1759_v20  ;;  %v1232_v29 = vsel %vm1228_vm2, %v2488_v45, %v1849_v46  ;;  %v1969_v26 = vunpack.i.h.bf16 %v3190_v18  ;;  %v1968_v15 = vunpack.i.l.bf16 %v3190_v18  ;;  %v1026_v8 = vrot.slane %v3486_v16, 1 }
  0xf7   : > { %v2104_v1 = vunpack.i.h.bf16 %v2102_v12  ;;  %v2103_v39 = vunpack.i.l.bf16 %v2102_v12  ;;  %v1231_v20 = vsel %vm1228_vm2, %v2489_v58, %v1848_v49  ;;  %v1248_v41 = vsel %vm1228_vm2, %v3499_v57, %v1889_v54  ;;  %v2491_v57 = vld [vmem:[%s2565_s16 + $0x30] sm:$0xff] }
  0xf8   : > { %2391 = vrot.lane.b32.xlu0 %v2926_v34, %s2522_s21  ;;  %v2117_v52 = vpop.permute.xlu1 %2116  ;;  %v2049_v56 = vunpack.i.h.bf16 %v3331_v43  ;;  %v1247_v2 = vsel %vm1228_vm2, %v3496_v30, %v1888_v37  ;;  %v2008_v18 = vunpack.i.l.bf16 %v3272_v42  ;;  %v2109_v12 = vunpack.i.h.bf16 %v3451_v5 }
  0xf9   : > { %v1460_v25 = vsel %vm1459_vm9, %v1427_v17, %v2103_v39  ;;  %v1461_v24 = vsel %vm1459_vm9, %v1428_v50, %v2104_v1  ;;  %v2108_v14 = vunpack.i.l.bf16 %v3451_v5  ;;  %v1264_v4 = vsel %vm1261_vm3, %v1231_v20, %v1928_v35 }
  0xfa   : > { %v3481_v59 = vpop.permute.xlu0 %2111  ;;  %2406 = vrot.lane.b32.xlu1 %v3381_v3, %s2524_s23  ;;  %v1762_v34 = vpack.c.bf16 %v1461_v24, %v1460_v25  ;;  %v1265_v1 = vsel %vm1261_vm3, %v1232_v29, %v1929_v60  ;;  %v2119_v39 = vunpack.i.h.bf16 %v2117_v52  ;;  %v2118_v17 = vunpack.i.l.bf16 %v2117_v52 }
  0xfb   : > { %v1281_v46 = vsel %vm1261_vm3, %v1248_v41, %v1969_v26  ;;  %v1280_v25 = vsel %vm1261_vm3, %v1247_v2, %v1968_v15  ;;  %v2009_v52 = vunpack.i.h.bf16 %v3272_v42  ;;  %v1297_v60 = vsel %vm1294_vm4, %v1264_v4, %v2008_v18 }
  0xfc   : > { %2401 = vrot.lane.b32.xlu0 %v2400_v0, %s2523_s22  ;;  %1764 = vmatpush3.bf16.xpose.msk.msra.mxu0 %vm3444_vm11, %v1762_v34  ;;  %v2127_v19 = vpop.permute.xlu1 %2126  ;;  %v2048_v0 = vunpack.i.l.bf16 %v3331_v43  ;;  %v3909_v43 = vld [vmem:[#allocation13_spill] sm:$0xff]  ;;  %v1314_v5 = vsel %vm1294_vm4, %v1281_v46, %v2049_v56  ;;  %v2114_v15 = vunpack.i.h.bf16 %v3481_v59  ;;  %v2113_v58 = vunpack.i.l.bf16 %v3481_v59  ;;  %v223_v59 = vld [vmem:[%s2565_s16 + $0x1a8] sm:$0x3] }
  0xfd   : > { %v2129_v24 = vunpack.i.h.bf16 %v2127_v19  ;;  %v2128_v49 = vunpack.i.l.bf16 %v2127_v19  ;;  %v1347_v29 = vsel %vm1327_vm5, %v1314_v5, %v2109_v12  ;;  %v1298_v46 = vsel %vm1294_vm4, %v1265_v1, %v2009_v52 }
  0xfe   : > { %v2122_v11 = vpop.permute.xlu0 %2121  ;;  %2416 = vrot.lane.b32.xlu1 %v3459_v13, %s2525_s24  ;;  %v1313_v54 = vsel %vm1294_vm4, %v1280_v25, %v2048_v0  ;;  %v1380_v26 = vsel %vm1360_vm6, %v1347_v29, %v2119_v39  ;;  %v1128_v5 = vrot.slane %v3477_v7, 2  ;;  %v1130_v52 = vrot.slane %v223_v59, 2 }
  0xff   : > { %v1346_v45 = vsel %vm1327_vm5, %v1313_v54, %v2108_v14  ;;  %v1413_v20 = vsel %vm1393_vm7, %v1380_v26, %v2129_v24  ;;  %v2124_v0 = vunpack.i.h.bf16 %v2122_v11  ;;  %v2123_v2 = vunpack.i.l.bf16 %v2122_v11 }
 0x100   : > { %2411 = vrot.lane.b32.xlu0 %v3909_v43, %s2524_s23  ;;  %v2137_v50 = vpop.permute.xlu1 %2136  ;;  %v1379_v19 = vsel %vm1360_vm6, %v1346_v45, %v2118_v17  ;;  %v1330_v54 = vsel %vm1327_vm5, %v1297_v60, %v2113_v58  ;;  %v1853_v26 = vunpack.i.l.bf16 %v3059_v61  ;;  %v1973_v61 = vunpack.i.l.bf16 %v3212_v36 }
 0x101   : > { %v2139_v34 = vunpack.i.h.bf16 %v2137_v50  ;;  %v2138_v37 = vunpack.i.l.bf16 %v2137_v50  ;;  %v1412_v42 = vsel %vm1393_vm7, %v1379_v19, %v2128_v49 }
 0x102   : > { %v2132_v35 = vpop.permute.xlu0 %2131  ;;  %2426 = vrot.lane.b32.xlu1 %v3375_v27, %s2520_s19 }
 0x103   : > { %v1445_v18 = vsel %vm1426_vm8, %v1412_v42, %v2138_v37  ;;  %v1446_v12 = vsel %vm1426_vm8, %v1413_v20, %v2139_v34  ;;  %v2134_v4 = vunpack.i.h.bf16 %v2132_v35  ;;  %v2133_v39 = vunpack.i.l.bf16 %v2132_v35 }
 0x104   : > { %2421 = vrot.lane.b32.xlu0 %v2949_v33, %s2525_s24  ;;  %v2147_v27 = vpop.permute.xlu1 %2146  ;;  %v1029_v34 = vrot.slane %v223_v59, 1  ;;  %v1363_v37 = vsel %vm1360_vm6, %v1330_v54, %v2123_v2  ;;  %v1974_v59 = vunpack.i.h.bf16 %v3212_v36  ;;  %v2493_v36 = vld [vmem:[%s2565_s16 + $0xf0] sm:$0xff] }
 0x105   : > { %v2149_v41 = vunpack.i.h.bf16 %v2147_v27  ;;  %v2148_v56 = vunpack.i.l.bf16 %v2147_v27  ;;  %v1396_v60 = vsel %vm1393_vm7, %v1363_v37, %v2133_v39  ;;  %v2450_v27 = vpack.i.bf16 %v3477_v7, %v3486_v16 }
 0x106   : > { %v2142_v14 = vpop.permute.xlu0 %2141  ;;  %2436 = vrot.lane.b32.xlu1 %v3909_v43, %s2521_s20  ;;  %v1331_v43 = vsel %vm1327_vm5, %v1298_v46, %v2114_v15  ;;  %v1131_v7 = vsel %vm449_vm1, %v1128_v5, %v1130_v52  ;;  %v2054_v39 = vunpack.i.h.bf16 %v3358_v6 }
 0x107   : > { %v1478_v17 = vsel %vm1459_vm9, %v1445_v18, %v2148_v56  ;;  %v1479_v50 = vsel %vm1459_vm9, %v1446_v12, %v2149_v41  ;;  %v2144_v24 = vunpack.i.h.bf16 %v2142_v14  ;;  %v2143_v11 = vunpack.i.l.bf16 %v2142_v14 }
 0x108   : > { %v1765_v25 = vpack.c.bf16 %v1479_v50, %v1478_v17  ;;  %2431 = vrot.lane.b32.xlu0 %v3381_v3, %s2521_s20  ;;  %v3554_v49 = vpop.permute.xlu1 %2156  ;;  %v1364_v35 = vsel %vm1360_vm6, %v1331_v43, %v2124_v0  ;;  %v1127_v3 = vrot.slane %v3486_v16, 2  ;;  %v1028_v41 = vsel %vm272_vm0, %v1026_v8, %v1027_v40  ;;  %v2490_v8 = vld [vmem:[%s2565_s16 + $0x38] sm:$0xff] }
 0x109   : > { %v1397_v45 = vsel %vm1393_vm7, %v1364_v35, %v2134_v4  ;;  %v1429_v15 = vsel %vm1426_vm8, %v1396_v60, %v2143_v11  ;;  %v1030_v56 = vsel %vm272_vm0, %v1027_v40, %v1029_v34  ;;  %v1893_v18 = vunpack.i.l.bf16 %v3097_v21 }
 0x10a   : > { %v2152_v1 = vpop.permute.xlu0 %2151  ;;  %2446 = vrot.lane.b32.xlu1 %v2949_v33, %s2522_s21  ;;  %1767 = vmatprep.subr.msk.bf16.mxu0 %vm3444_vm11, %v1765_v25  ;;  %v1430_v58 = vsel %vm1426_vm8, %v1397_v45, %v2144_v24  ;;  %v1129_v16 = vsel %vm449_vm1, %v1127_v3, %v1128_v5  ;;  %v1234_v40 = vsel %vm1228_vm2, %v2490_v8, %v1854_v55  ;;  %v1934_v12 = vunpack.i.h.bf16 %v3129_v47  ;;  %v3611_v55 = vld [vmem:[%s3829_s1] sm:$0xff] }
 0x10b   : > { %v2154_v29 = vunpack.i.h.bf16 %v2152_v1  ;;  %v2153_v19 = vunpack.i.l.bf16 %v2152_v1  ;;  %v1933_v14 = vunpack.i.l.bf16 %v3129_v47  ;;  %v2460_v30 = vpack.i.bf16 %v1030_v56, %v1028_v41  ;;  %v2492_v47 = vld [vmem:[%s2565_s16 + $0xf8] sm:$0xff]  ;;  %1757 = vmatprep.mubr.f32.mxu0 %v3611_v55 }
 0x10c   : > { %2441 = vrot.lane.b32.xlu0 %v3459_v13, %s2522_s21  ;;  %v2167_v33 = vpop.permute.xlu1 %2166  ;;  %v1894_v13 = vunpack.i.h.bf16 %v3097_v21  ;;  %v2053_v17 = vunpack.i.l.bf16 %v3358_v6  ;;  %v2470_v46 = vpack.i.bf16 %v1131_v7, %v1129_v16  ;;  %v1249_v25 = vsel %vm1228_vm2, %v2493_v36, %v1893_v18 }
 0x10d   : > { %v1462_v42 = vsel %vm1459_vm9, %v1429_v15, %v2153_v19  ;;  %v1463_v20 = vsel %vm1459_vm9, %v1430_v58, %v2154_v29  ;;  %v2013_v24 = vunpack.i.l.bf16 %v3286_v48  ;;  %v2159_v11 = vunpack.i.h.bf16 %v3554_v49 }
 0x10e   : > { %v1768_v0 = vpack.c.bf16 %v1463_v20, %v1462_v42  ;;  %v3586_v2 = vpop.permute.xlu0 %2161  ;;  %2456 = vrot.lane.b32.xlu1 %v2455_v44, %s2523_s22  ;;  %v1233_v44 = vsel %vm1228_vm2, %v2491_v57, %v1853_v26  ;;  %v1250_v4 = vsel %vm1228_vm2, %v2492_v47, %v1894_v13  ;;  %v2158_v54 = vunpack.i.l.bf16 %v3554_v49 }
 0x10f   : > { %v1267_v43 = vsel %vm1261_vm3, %v1234_v40, %v1934_v12  ;;  %v1266_v6 = vsel %vm1261_vm3, %v1233_v44, %v1933_v14  ;;  %v2169_v5 = vunpack.i.h.bf16 %v2167_v33  ;;  %v2168_v34 = vunpack.i.l.bf16 %v2167_v33 }
 0x110   : > { %2451 = vrot.lane.b32.xlu0 %v2450_v27, %s2523_s22  ;;  %1770 = vmatpush3.bf16.xpose.msk.msra.mxu0 %vm3444_vm11, %v1768_v0  ;;  %v2177_v21 = vpop.permute.xlu1 %2176  ;;  %v1282_v37 = vsel %vm1261_vm3, %v1249_v25, %v1973_v61  ;;  %v1283_v35 = vsel %vm1261_vm3, %v1250_v4, %v1974_v59  ;;  %v2014_v19 = vunpack.i.h.bf16 %v3286_v48  ;;  %v1299_v26 = vsel %vm1294_vm4, %v1266_v6, %v2013_v24 }
 0x111   : > { %v2179_v1 = vunpack.i.h.bf16 %v2177_v21  ;;  %v2178_v3 = vunpack.i.l.bf16 %v2177_v21  ;;  %v1315_v52 = vsel %vm1294_vm4, %v1282_v37, %v2053_v17  ;;  %v1316_v60 = vsel %vm1294_vm4, %v1283_v35, %v2054_v39 }
 0x112   : > { %v2172_v50 = vpop.permute.xlu0 %2171  ;;  %2466 = vrot.lane.b32.xlu1 %v3884_v10, %s2524_s23  ;;  %v1348_v15 = vsel %vm1327_vm5, %v1315_v52, %v2158_v54  ;;  %v1349_v58 = vsel %vm1327_vm5, %v1316_v60, %v2159_v11  ;;  %v2164_v42 = vunpack.i.h.bf16 %v3586_v2  ;;  %v2163_v20 = vunpack.i.l.bf16 %v3586_v2 }
 0x113   : > { %v1381_v33 = vsel %vm1360_vm6, %v1348_v15, %v2168_v34  ;;  %v1382_v27 = vsel %vm1360_vm6, %v1349_v58, %v2169_v5  ;;  %v2174_v0 = vunpack.i.h.bf16 %v2172_v50  ;;  %v2173_v18 = vunpack.i.l.bf16 %v2172_v50 }
 0x114   : > { %2461 = vrot.lane.b32.xlu0 %v2460_v30, %s2524_s23  ;;  %v2187_v10 = vpop.permute.xlu1 %2186  ;;  %v1415_v48 = vsel %vm1393_vm7, %v1382_v27, %v2179_v1  ;;  %v1300_v21 = vsel %vm1294_vm4, %v1267_v43, %v2014_v19  ;;  %v1332_v61 = vsel %vm1327_vm5, %v1299_v26, %v2163_v20 }
 0x115   : > { %v2189_v49 = vunpack.i.h.bf16 %v2187_v10  ;;  %v2188_v45 = vunpack.i.l.bf16 %v2187_v10  ;;  %v1333_v47 = vsel %vm1327_vm5, %v1300_v21, %v2164_v42  ;;  %v1365_v4 = vsel %vm1360_vm6, %v1332_v61, %v2173_v18 }
 0x116   : > { %v2182_v29 = vpop.permute.xlu0 %2181  ;;  %2476 = vrot.lane.b32.xlu1 %v2947_v22, %s2525_s24  ;;  %v1414_v22 = vsel %vm1393_vm7, %v1381_v33, %v2178_v3  ;;  %v1366_v39 = vsel %vm1360_vm6, %v1333_v47, %v2174_v0 }
 0x117   : > { %v1447_v16 = vsel %vm1426_vm8, %v1414_v22, %v2188_v45  ;;  %v1448_v7 = vsel %vm1426_vm8, %v1415_v48, %v2189_v49  ;;  %v2184_v40 = vunpack.i.h.bf16 %v2182_v29  ;;  %v2183_v12 = vunpack.i.l.bf16 %v2182_v29 }
 0x118   : > { %2471 = vrot.lane.b32.xlu0 %v2470_v46, %s2525_s24  ;;  %v2197_v41 = vpop.permute.xlu1 %2196 }
 0x119   : > { %v2199_v56 = vunpack.i.h.bf16 %v2197_v41  ;;  %v2198_v13 = vunpack.i.l.bf16 %v2197_v41  ;;  %v1398_v50 = vsel %vm1393_vm7, %v1365_v4, %v2183_v12  ;;  %v1399_v46 = vsel %vm1393_vm7, %v1366_v39, %v2184_v40 }
 0x11a   : > { %v2192_v8 = vpop.permute.xlu0 %2191 }
 0x11b   : > { %v1480_v2 = vsel %vm1459_vm9, %v1447_v16, %v2198_v13  ;;  %v1481_v14 = vsel %vm1459_vm9, %v1448_v7, %v2199_v56  ;;  %v2194_v57 = vunpack.i.h.bf16 %v2192_v8  ;;  %v2193_v44 = vunpack.i.l.bf16 %v2192_v8 }
 0x11c   : > { %v1771_v30 = vpack.c.bf16 %v1481_v14, %v1480_v2  ;;  %v2207_v59 = vpop.permute.xlu1 %2206 }
 0x11d   : > { %v1431_v24 = vsel %vm1426_vm8, %v1398_v50, %v2193_v44  ;;  %v1432_v11 = vsel %vm1426_vm8, %v1399_v46, %v2194_v57  ;;  %v2209_v35 = vunpack.i.h.bf16 %v2207_v59  ;;  %v2208_v1 = vunpack.i.l.bf16 %v2207_v59 }
 0x11e   : > { %v2202_v17 = vpop.permute.xlu0 %2201  ;;  %1773 = vmatprep.subr.msk.bf16.mxu0 %vm3444_vm11, %v1771_v30 }
 0x11f   : > { %v2204_v36 = vunpack.i.h.bf16 %v2202_v17  ;;  %v2203_v25 = vunpack.i.l.bf16 %v2202_v17  ;;  %v1317_v15 = vsel %vm1294_vm4, %v3220_v23, %v2208_v1  ;;  %v1318_v58 = vsel %vm1294_vm4, %v3217_v31, %v2209_v35 }
 0x120   : > { %v2217_v54 = vpop.permute.xlu1 %2216 }
 0x121   : > { %v1464_v43 = vsel %vm1459_vm9, %v1431_v24, %v2203_v25  ;;  %v1465_v6 = vsel %vm1459_vm9, %v1432_v11, %v2204_v36  ;;  %v2219_v52 = vunpack.i.h.bf16 %v2217_v54  ;;  %v2218_v60 = vunpack.i.l.bf16 %v2217_v54 }
 0x122   : > { %v1774_v5 = vpack.c.bf16 %v1465_v6, %v1464_v43  ;;  %v2212_v34 = vpop.permute.xlu0 %2211 }
 0x123   : > { %v2214_v45 = vunpack.i.h.bf16 %v2212_v34  ;;  %v2213_v29 = vunpack.i.l.bf16 %v2212_v34  ;;  %v1334_v20 = vsel %vm1327_vm5, %v3292_v63, %v2218_v60  ;;  %v1335_v41 = vsel %vm1327_vm5, %v3296_v53, %v2219_v52 }
 0x124   : > { %1776 = vmatpush3.bf16.xpose.msk.msra.mxu0 %vm3444_vm11, %v1774_v5  ;;  %v2227_v10 = vpop.permute.xlu1 %2226 }
 0x125   : > { %v2229_v19 = vunpack.i.h.bf16 %v2227_v10  ;;  %v2228_v26 = vunpack.i.l.bf16 %v2227_v10  ;;  %v1351_v23 = vsel %vm1327_vm5, %v1318_v58, %v2214_v45  ;;  %v1350_v31 = vsel %vm1327_vm5, %v1317_v15, %v2213_v29 }
 0x126   : > { %v2222_v37 = vpop.permute.xlu0 %2221 }
 0x127   : > { %v2224_v33 = vunpack.i.h.bf16 %v2222_v37  ;;  %v2223_v27 = vunpack.i.l.bf16 %v2222_v37  ;;  %v1367_v7 = vsel %vm1360_vm6, %v1334_v20, %v2228_v26  ;;  %v1368_v8 = vsel %vm1360_vm6, %v1335_v41, %v2229_v19 }
 0x128   : > { %v2237_v3 = vpop.permute.xlu1 %2236 }
 0x129   : > { %v2239_v22 = vunpack.i.h.bf16 %v2237_v3  ;;  %v2238_v48 = vunpack.i.l.bf16 %v2237_v3  ;;  %v1383_v63 = vsel %vm1360_vm6, %v1350_v31, %v2223_v27  ;;  %v1384_v40 = vsel %vm1360_vm6, %v1351_v23, %v2224_v33 }
 0x12a   : > { %v2232_v49 = vpop.permute.xlu0 %2231 }
 0x12b   : > { %v2234_v56 = vunpack.i.h.bf16 %v2232_v49  ;;  %v2233_v13 = vunpack.i.l.bf16 %v2232_v49  ;;  %v1400_v14 = vsel %vm1393_vm7, %v1367_v7, %v2238_v48  ;;  %v1401_v21 = vsel %vm1393_vm7, %v1368_v8, %v2239_v22 }
 0x12c   : > { %v2247_v42 = vpop.permute.xlu1 %2246 }
 0x12d   : > { %v2249_v0 = vunpack.i.h.bf16 %v2247_v42  ;;  %v2248_v18 = vunpack.i.l.bf16 %v2247_v42  ;;  %v1416_v44 = vsel %vm1393_vm7, %v1383_v63, %v2233_v13  ;;  %v1417_v59 = vsel %vm1393_vm7, %v1384_v40, %v2234_v56 }
 0x12e   : > { %v2242_v16 = vpop.permute.xlu0 %2241 }
 0x12f   : > { %v2244_v53 = vunpack.i.h.bf16 %v2242_v16  ;;  %v2243_v12 = vunpack.i.l.bf16 %v2242_v16  ;;  %v1433_v61 = vsel %vm1426_vm8, %v1400_v14, %v2248_v18  ;;  %v1434_v47 = vsel %vm1426_vm8, %v1401_v21, %v2249_v0 }
 0x130   : > { %v2257_v2 = vpop.permute.xlu1 %2256 }
 0x131   : > { %v2259_v30 = vunpack.i.h.bf16 %v2257_v2  ;;  %v2258_v57 = vunpack.i.l.bf16 %v2257_v2  ;;  %v1449_v36 = vsel %vm1426_vm8, %v1416_v44, %v2243_v12  ;;  %v1450_v25 = vsel %vm1426_vm8, %v1417_v59, %v2244_v53 }
 0x132   : > { %v2252_v4 = vpop.permute.xlu0 %2251 }
 0x133   : > { %v1466_v39 = vsel %vm1459_vm9, %v1433_v61, %v2258_v57  ;;  %v1467_v17 = vsel %vm1459_vm9, %v1434_v47, %v2259_v30  ;;  %v2254_v50 = vunpack.i.h.bf16 %v2252_v4  ;;  %v2253_v46 = vunpack.i.l.bf16 %v2252_v4 }
 0x134   : > { %v1780_v24 = vpack.c.bf16 %v1467_v17, %v1466_v39  ;;  %v2267_v11 = vpop.permute.xlu1 %2266 }
 0x135   : > { %v1482_v54 = vsel %vm1459_vm9, %v1449_v36, %v2253_v46  ;;  %v1483_v43 = vsel %vm1459_vm9, %v1450_v25, %v2254_v50  ;;  %v2269_v52 = vunpack.i.h.bf16 %v2267_v11  ;;  %v2268_v60 = vunpack.i.l.bf16 %v2267_v11 }
 0x136   : > { %v1777_v6 = vpack.c.bf16 %v1483_v43, %v1482_v54  ;;  %v2262_v5 = vpop.permute.xlu0 %2261 }
 0x137   : > { %v2264_v37 = vunpack.i.h.bf16 %v2262_v5  ;;  %v2263_v35 = vunpack.i.l.bf16 %v2262_v5 }
 0x138   : > { %1779 = vmatprep.subr.msk.bf16.mxu0 %vm3444_vm11, %v1777_v6  ;;  %v2277_v34 = vpop.permute.xlu1 %2276 }
 0x139   : > { %1782 = vmatpush3.bf16.xpose.msk.msra.mxu0 %vm3444_vm11, %v1780_v24  ;;  %v1319_v49 = vsel %vm1294_vm4, %v3250_v38, %v2263_v35  ;;  %v1320_v45 = vsel %vm1294_vm4, %v3253_v51, %v2264_v37  ;;  %v2279_v29 = vunpack.i.h.bf16 %v2277_v34  ;;  %v2278_v19 = vunpack.i.l.bf16 %v2277_v34 }
 0x13a   : > { %v2272_v10 = vpop.permute.xlu0 %2271  ;;  %v1352_v20 = vsel %vm1327_vm5, %v1319_v49, %v2268_v60  ;;  %v1353_v41 = vsel %vm1327_vm5, %v1320_v45, %v2269_v52 }
 0x13b   : > { %v1385_v22 = vsel %vm1360_vm6, %v1352_v20, %v2278_v19  ;;  %v1386_v48 = vsel %vm1360_vm6, %v1353_v41, %v2279_v29  ;;  %v2274_v38 = vunpack.i.h.bf16 %v2272_v10  ;;  %v2273_v56 = vunpack.i.l.bf16 %v2272_v10  ;;  %v3910_v29 = vld [vmem:[#allocation9_spill] sm:$0xff] }
 0x13c   : > { %v2287_v1 = vpop.permute.xlu1 %2286 }
 0x13d   : > { %v2289_v15 = vunpack.i.h.bf16 %v2287_v1  ;;  %v2288_v58 = vunpack.i.l.bf16 %v2287_v1  ;;  %v1336_v44 = vsel %vm1327_vm5, %v3313_v32, %v2273_v56  ;;  %v1337_v59 = vsel %vm1327_vm5, %v3317_v9, %v2274_v38 }
 0x13e   : > { %v2282_v3 = vpop.permute.xlu0 %2281 }
 0x13f   : > { %v1418_v51 = vsel %vm1393_vm7, %v1385_v22, %v2288_v58  ;;  %v1419_v0 = vsel %vm1393_vm7, %v1386_v48, %v2289_v15  ;;  %v2284_v23 = vunpack.i.h.bf16 %v2282_v3  ;;  %v2283_v31 = vunpack.i.l.bf16 %v2282_v3 }
 0x140   : > { %v2297_v26 = vpop.permute.xlu1 %2296 }
 0x141   : > { %v2299_v33 = vunpack.i.h.bf16 %v2297_v26  ;;  %v2298_v27 = vunpack.i.l.bf16 %v2297_v26  ;;  %v1369_v61 = vsel %vm1360_vm6, %v1336_v44, %v2283_v31  ;;  %v1370_v47 = vsel %vm1360_vm6, %v1337_v59, %v2284_v23 }
 0x142   : > { %v2292_v42 = vpop.permute.xlu0 %2291 }
 0x143   : > { %v1451_v7 = vsel %vm1426_vm8, %v1418_v51, %v2298_v27  ;;  %v1452_v8 = vsel %vm1426_vm8, %v1419_v0, %v2299_v33  ;;  %v2294_v40 = vunpack.i.h.bf16 %v2292_v42  ;;  %v2293_v53 = vunpack.i.l.bf16 %v2292_v42  ;;  %v3911_v33 = vld [vmem:[#allocation4_spill] sm:$0xff]  ;;  %v3912_v42 = vld [vmem:[#allocation2_spill] sm:$0xff] }
 0x144   : > { %v2307_v13 = vpop.permute.xlu1 %2306 }
 0x145   : > { %v2309_v18 = vunpack.i.h.bf16 %v2307_v13  ;;  %v2308_v16 = vunpack.i.l.bf16 %v2307_v13  ;;  %v1402_v39 = vsel %vm1393_vm7, %v1369_v61, %v2293_v53  ;;  %v1403_v17 = vsel %vm1393_vm7, %v1370_v47, %v2294_v40 }
 0x146   : > { %v2302_v63 = vpop.permute.xlu0 %2301 }
 0x147   : > { %v1484_v12 = vsel %vm1459_vm9, %v1451_v7, %v2308_v16  ;;  %v1485_v2 = vsel %vm1459_vm9, %v1452_v8, %v2309_v18  ;;  %v2304_v21 = vunpack.i.h.bf16 %v2302_v63  ;;  %v2303_v30 = vunpack.i.l.bf16 %v2302_v63 }
 0x148   : > { %v1783_v14 = vpack.c.bf16 %v1485_v2, %v1484_v12  ;;  %v2317_v57 = vpop.permute.xlu1 %2316 }
 0x149   : > { %v1435_v36 = vsel %vm1426_vm8, %v1402_v39, %v2303_v30  ;;  %v1436_v32 = vsel %vm1426_vm8, %v1403_v17, %v2304_v21  ;;  %v2319_v5 = vunpack.i.h.bf16 %v2317_v57  ;;  %v2318_v34 = vunpack.i.l.bf16 %v2317_v57 }
 0x14a   : > { %v2312_v4 = vpop.permute.xlu0 %2311  ;;  %1785 = vmatprep.subr.msk.bf16.mxu0 %vm3444_vm11, %v1783_v14 }
 0x14b   : > { %v2314_v50 = vunpack.i.h.bf16 %v2312_v4  ;;  %v2313_v46 = vunpack.i.l.bf16 %v2312_v4  ;;  %v1321_v45 = vsel %vm1294_vm4, %v3239_v62, %v2318_v34  ;;  %v1322_v19 = vsel %vm1294_vm4, %v3910_v29, %v2319_v5 }
 0x14c   : > { %v2327_v25 = vpop.permute.xlu1 %2326 }
 0x14d   : > { %v1468_v9 = vsel %vm1459_vm9, %v1435_v36, %v2313_v46  ;;  %v1469_v24 = vsel %vm1459_vm9, %v1436_v32, %v2314_v50  ;;  %v2329_v37 = vunpack.i.h.bf16 %v2327_v25  ;;  %v2328_v35 = vunpack.i.l.bf16 %v2327_v25 }
 0x14e   : > { %v1786_v11 = vpack.c.bf16 %v1469_v24, %v1468_v9  ;;  %v2322_v54 = vpop.permute.xlu0 %2321 }
 0x14f   : > { %v2324_v3 = vunpack.i.h.bf16 %v2322_v54  ;;  %v2323_v52 = vunpack.i.l.bf16 %v2322_v54  ;;  %v1338_v27 = vsel %vm1327_vm5, %v3911_v33, %v2328_v35  ;;  %v1339_v20 = vsel %vm1327_vm5, %v3912_v42, %v2329_v37  ;;  %v3913_v37 = vld [vmem:[#allocation14_spill] sm:$0xff] }
 0x150   : > { %1788 = vmatpush3.bf16.xpose.msk.msra.mxu0 %vm3444_vm11, %v1786_v11  ;;  %v2337_v43 = vpop.permute.xlu1 %2336 }
 0x151   : > { %v2339_v60 = vunpack.i.h.bf16 %v2337_v43  ;;  %v2338_v49 = vunpack.i.l.bf16 %v2337_v43  ;;  %v1355_v62 = vsel %vm1327_vm5, %v1322_v19, %v2324_v3  ;;  %v1354_v0 = vsel %vm1327_vm5, %v1321_v45, %v2323_v52 }
 0x152   : > { %v2332_v6 = vpop.permute.xlu0 %2331 }
 0x153   : > { %v2334_v26 = vunpack.i.h.bf16 %v2332_v6  ;;  %v2333_v15 = vunpack.i.l.bf16 %v2332_v6  ;;  %v1371_v18 = vsel %vm1360_vm6, %v1338_v27, %v2338_v49  ;;  %v1372_v16 = vsel %vm1360_vm6, %v1339_v20, %v2339_v60 }
 0x154   : > { %v2347_v10 = vpop.permute.xlu1 %2346 }
 0x155   : > { %v2349_v41 = vunpack.i.h.bf16 %v2347_v10  ;;  %v2348_v22 = vunpack.i.l.bf16 %v2347_v10  ;;  %v1387_v23 = vsel %vm1360_vm6, %v1354_v0, %v2333_v15  ;;  %v1388_v31 = vsel %vm1360_vm6, %v1355_v62, %v2334_v26 }
 0x156   : > { %v2342_v1 = vpop.permute.xlu0 %2341 }
 0x157   : > { %v2344_v48 = vunpack.i.h.bf16 %v2342_v1  ;;  %v2343_v38 = vunpack.i.l.bf16 %v2342_v1  ;;  %v1404_v40 = vsel %vm1393_vm7, %v1371_v18, %v2348_v22  ;;  %v1405_v53 = vsel %vm1393_vm7, %v1372_v16, %v2349_v41  ;;  %v3914_v1 = vld [vmem:[#allocation12_spill] sm:$0xff] }
 0x158   : > { %v2357_v58 = vpop.permute.xlu1 %2356 }
 0x159   : > { %v2359_v56 = vunpack.i.h.bf16 %v2357_v58  ;;  %v2358_v13 = vunpack.i.l.bf16 %v2357_v58  ;;  %v1420_v14 = vsel %vm1393_vm7, %v1387_v23, %v2343_v38  ;;  %v1421_v21 = vsel %vm1393_vm7, %v1388_v31, %v2344_v48 }
 0x15a   : > { %v2352_v51 = vpop.permute.xlu0 %2351 }
 0x15b   : > { %v2354_v7 = vunpack.i.h.bf16 %v2352_v51  ;;  %v2353_v8 = vunpack.i.l.bf16 %v2352_v51  ;;  %v1437_v30 = vsel %vm1426_vm8, %v1404_v40, %v2358_v13  ;;  %v1438_v57 = vsel %vm1426_vm8, %v1405_v53, %v2359_v56 }
 0x15c   : > { %v2367_v63 = vpop.permute.xlu1 %2366 }
 0x15d   : > { %v2369_v12 = vunpack.i.h.bf16 %v2367_v63  ;;  %v2368_v2 = vunpack.i.l.bf16 %v2367_v63  ;;  %v1453_v39 = vsel %vm1426_vm8, %v1420_v14, %v2353_v8  ;;  %v1454_v17 = vsel %vm1426_vm8, %v1421_v21, %v2354_v7  ;;  %v3916_v21 = vld [vmem:[#allocation5_spill] sm:$0xff] }
 0x15e   : > { %v2362_v44 = vpop.permute.xlu0 %2361 }
 0x15f   : > { %v1470_v59 = vsel %vm1459_vm9, %v1437_v30, %v2368_v2  ;;  %v1471_v61 = vsel %vm1459_vm9, %v1438_v57, %v2369_v12  ;;  %v2364_v47 = vunpack.i.h.bf16 %v2362_v44  ;;  %v2363_v4 = vunpack.i.l.bf16 %v2362_v44  ;;  %v3915_v2 = vld [vmem:[#allocation6_spill] sm:$0xff] }
 0x160   : > { %v1792_v50 = vpack.c.bf16 %v1471_v61, %v1470_v59  ;;  %v2377_v46 = vpop.permute.xlu1 %2376 }
 0x161   : > { %v1486_v36 = vsel %vm1459_vm9, %v1453_v39, %v2363_v4  ;;  %v1487_v32 = vsel %vm1459_vm9, %v1454_v17, %v2364_v47  ;;  %v2379_v34 = vunpack.i.h.bf16 %v2377_v46  ;;  %v2378_v10 = vunpack.i.l.bf16 %v2377_v46 }
 0x162   : > { %v1789_v25 = vpack.c.bf16 %v1487_v32, %v1486_v36  ;;  %v2372_v9 = vpop.permute.xlu0 %2371 }
 0x163   : > { %v2374_v54 = vunpack.i.h.bf16 %v2372_v9  ;;  %v2373_v43 = vunpack.i.l.bf16 %v2372_v9 }
 0x164   : > { %1791 = vmatprep.subr.msk.bf16.mxu0 %vm3444_vm11, %v1789_v25  ;;  %v2387_v24 = vpop.permute.xlu1 %2386 }
 0x165   : > { %1794 = vmatpush3.bf16.xpose.msk.msra.mxu0 %vm3444_vm11, %v1792_v50  ;;  %v1323_v35 = vsel %vm1294_vm4, %v3913_v37, %v2373_v43  ;;  %v1324_v3 = vsel %vm1294_vm4, %v3914_v1, %v2374_v54  ;;  %v2389_v52 = vunpack.i.h.bf16 %v2387_v24  ;;  %v2388_v60 = vunpack.i.l.bf16 %v2387_v24 }
 0x166   : > { %v2382_v11 = vpop.permute.xlu0 %2381  ;;  %v1356_v58 = vsel %vm1327_vm5, %v1323_v35, %v2378_v10  ;;  %v1357_v33 = vsel %vm1327_vm5, %v1324_v3, %v2379_v34 }
 0x167   : > { %v1389_v27 = vsel %vm1360_vm6, %v1356_v58, %v2388_v60  ;;  %v1390_v42 = vsel %vm1360_vm6, %v1357_v33, %v2389_v52  ;;  %v2384_v20 = vunpack.i.h.bf16 %v2382_v11  ;;  %v2383_v41 = vunpack.i.l.bf16 %v2382_v11  ;;  %v3917_v52 = vld [vmem:[#allocation11_spill] sm:$0xff] }
 0x168   : > { %v2397_v6 = vpop.permute.xlu1 %2396  ;;  %v3920_v33 = vld [vmem:[#allocation3_spill] sm:$0xff] }
 0x169   : > { %v2399_v45 = vunpack.i.h.bf16 %v2397_v6  ;;  %v2398_v29 = vunpack.i.l.bf16 %v2397_v6  ;;  %v1340_v14 = vsel %vm1327_vm5, %v3915_v2, %v2383_v41  ;;  %v1341_v30 = vsel %vm1327_vm5, %v3916_v21, %v2384_v20 }
 0x16a   : > { %v2392_v5 = vpop.permute.xlu0 %2391 }
 0x16b   : > { %v1422_v48 = vsel %vm1393_vm7, %v1389_v27, %v2398_v29  ;;  %v1423_v38 = vsel %vm1393_vm7, %v1390_v42, %v2399_v45  ;;  %v2394_v51 = vunpack.i.h.bf16 %v2392_v5  ;;  %v2393_v62 = vunpack.i.l.bf16 %v2392_v5 }
 0x16c   : > { %v2407_v49 = vpop.permute.xlu1 %2406 }
 0x16d   : > { %v2409_v19 = vunpack.i.h.bf16 %v2407_v49  ;;  %v2408_v26 = vunpack.i.l.bf16 %v2407_v49  ;;  %v1373_v57 = vsel %vm1360_vm6, %v1340_v14, %v2393_v62  ;;  %v1374_v44 = vsel %vm1360_vm6, %v1341_v30, %v2394_v51  ;;  %v3918_v49 = vld [vmem:[#allocation10_spill] sm:$0xff] }
 0x16e   : > { %v2402_v15 = vpop.permute.xlu0 %2401 }
 0x16f   : > { %v1455_v0 = vsel %vm1426_vm8, %v1422_v48, %v2408_v26  ;;  %v1456_v18 = vsel %vm1426_vm8, %v1423_v38, %v2409_v19  ;;  %v2404_v23 = vunpack.i.h.bf16 %v2402_v15  ;;  %v2403_v31 = vunpack.i.l.bf16 %v2402_v15  ;;  %v3919_v15 = vld [vmem:[#allocation15_spill] sm:$0xff] }
 0x170   : > { %v2417_v22 = vpop.permute.xlu1 %2416 }
 0x171   : > { %v2419_v56 = vunpack.i.h.bf16 %v2417_v22  ;;  %v2418_v13 = vunpack.i.l.bf16 %v2417_v22  ;;  %v1406_v61 = vsel %vm1393_vm7, %v1373_v57, %v2403_v31  ;;  %v1407_v47 = vsel %vm1393_vm7, %v1374_v44, %v2404_v23 }
 0x172   : > { %v2412_v16 = vpop.permute.xlu0 %2411 }
 0x173   : > { %v1488_v7 = vsel %vm1459_vm9, %v1455_v0, %v2418_v13  ;;  %v1489_v8 = vsel %vm1459_vm9, %v1456_v18, %v2419_v56  ;;  %v2414_v40 = vunpack.i.h.bf16 %v2412_v16  ;;  %v2413_v53 = vunpack.i.l.bf16 %v2412_v16 }
 0x174   : > { %v1795_v63 = vpack.c.bf16 %v1489_v8, %v1488_v7  ;;  %v2427_v12 = vpop.permute.xlu1 %2426 }
 0x175   : > { %v1439_v17 = vsel %vm1426_vm8, %v1406_v61, %v2413_v53  ;;  %v1440_v50 = vsel %vm1426_vm8, %v1407_v47, %v2414_v40  ;;  %v2429_v54 = vunpack.i.h.bf16 %v2427_v12  ;;  %v2428_v43 = vunpack.i.l.bf16 %v2427_v12 }
 0x176   : > { %v2422_v59 = vpop.permute.xlu0 %2421  ;;  %1797 = vmatprep.subr.msk.bf16.mxu0 %vm3444_vm11, %v1795_v63 }
 0x177   : > { %v2424_v4 = vunpack.i.h.bf16 %v2422_v59  ;;  %v2423_v39 = vunpack.i.l.bf16 %v2422_v59  ;;  %v1325_v60 = vsel %vm1294_vm4, %v3917_v52, %v2428_v43  ;;  %v1326_v45 = vsel %vm1294_vm4, %v3918_v49, %v2429_v54 }
 0x178   : > { %v2437_v46 = vpop.permute.xlu1 %2436 }
 0x179   : > { %v1472_v36 = vsel %vm1459_vm9, %v1439_v17, %v2423_v39  ;;  %v1473_v32 = vsel %vm1459_vm9, %v1440_v50, %v2424_v4  ;;  %v2439_v5 = vunpack.i.h.bf16 %v2437_v46  ;;  %v2438_v34 = vunpack.i.l.bf16 %v2437_v46 }
 0x17a   : > { %v1798_v25 = vpack.c.bf16 %v1473_v32, %v1472_v36  ;;  %v2432_v9 = vpop.permute.xlu0 %2431 }
 0x17b   : > { %v2434_v37 = vunpack.i.h.bf16 %v2432_v9  ;;  %v2433_v35 = vunpack.i.l.bf16 %v2432_v9  ;;  %v1342_v58 = vsel %vm1327_vm5, %v3919_v15, %v2438_v34  ;;  %v1343_v27 = vsel %vm1327_vm5, %v3920_v33, %v2439_v5 }
 0x17c   : > { %1800 = vmatpush3.bf16.xpose.msk.msra.mxu0 %vm3444_vm11, %v1798_v25  ;;  %v2447_v24 = vpop.permute.xlu1 %2446 }
 0x17d   : > { %v2449_v1 = vunpack.i.h.bf16 %v2447_v24  ;;  %v2448_v3 = vunpack.i.l.bf16 %v2447_v24  ;;  %v1359_v13 = vsel %vm1327_vm5, %v1326_v45, %v2434_v37  ;;  %v1358_v51 = vsel %vm1327_vm5, %v1325_v60, %v2433_v35 }
 0x17e   : > { %v2442_v11 = vpop.permute.xlu0 %2441 }
 0x17f   : > { %v2444_v29 = vunpack.i.h.bf16 %v2442_v11  ;;  %v2443_v19 = vunpack.i.l.bf16 %v2442_v11  ;;  %v1375_v62 = vsel %vm1360_vm6, %v1342_v58, %v2448_v3  ;;  %v1376_v0 = vsel %vm1360_vm6, %v1343_v27, %v2449_v1 }
 0x180   : > { %v2457_v6 = vpop.permute.xlu1 %2456 }
 0x181   : > { %v2459_v42 = vunpack.i.h.bf16 %v2457_v6  ;;  %v2458_v20 = vunpack.i.l.bf16 %v2457_v6  ;;  %v1391_v18 = vsel %vm1360_vm6, %v1358_v51, %v2443_v19  ;;  %v1392_v16 = vsel %vm1360_vm6, %v1359_v13, %v2444_v29 }
 0x182   : > { %v2452_v10 = vpop.permute.xlu0 %2451 }
 0x183   : > { %v2454_v41 = vunpack.i.h.bf16 %v2452_v10  ;;  %v2453_v22 = vunpack.i.l.bf16 %v2452_v10  ;;  %v1408_v8 = vsel %vm1393_vm7, %v1375_v62, %v2458_v20  ;;  %v1409_v63 = vsel %vm1393_vm7, %v1376_v0, %v2459_v42 }
 0x184   : > { %v2467_v26 = vpop.permute.xlu1 %2466 }
 0x185   : > { %v2469_v48 = vunpack.i.h.bf16 %v2467_v26  ;;  %v2468_v38 = vunpack.i.l.bf16 %v2467_v26  ;;  %v1424_v12 = vsel %vm1393_vm7, %v1391_v18, %v2453_v22  ;;  %v1425_v2 = vsel %vm1393_vm7, %v1392_v16, %v2454_v41 }
 0x186   : > { %v2462_v56 = vpop.permute.xlu0 %2461 }
 0x187   : > { %v2464_v23 = vunpack.i.h.bf16 %v2462_v56  ;;  %v2463_v31 = vunpack.i.l.bf16 %v2462_v56  ;;  %v1441_v14 = vsel %vm1426_vm8, %v1408_v8, %v2468_v38  ;;  %v1442_v21 = vsel %vm1426_vm8, %v1409_v63, %v2469_v48 }
 0x188   : > { %v2477_v7 = vpop.permute.xlu1 %2476 }
 0x189   : > { %v2479_v40 = vunpack.i.h.bf16 %v2477_v7  ;;  %v2478_v53 = vunpack.i.l.bf16 %v2477_v7  ;;  %v1457_v47 = vsel %vm1426_vm8, %v1424_v12, %v2463_v31  ;;  %v1458_v4 = vsel %vm1426_vm8, %v1425_v2, %v2464_v23 }
 0x18a   : > { %v2472_v30 = vpop.permute.xlu0 %2471 }
 0x18b   : > { %v1474_v57 = vsel %vm1459_vm9, %v1441_v14, %v2478_v53  ;;  %v1475_v44 = vsel %vm1459_vm9, %v1442_v21, %v2479_v40  ;;  %v2474_v59 = vunpack.i.h.bf16 %v2472_v30  ;;  %v2473_v61 = vunpack.i.l.bf16 %v2472_v30 }
 0x18c   : > { %v1804_v39 = vpack.c.bf16 %v1475_v44, %v1474_v57 }
 0x18d   : > { %v1490_v17 = vsel %vm1459_vm9, %v1457_v47, %v2473_v61  ;;  %v1491_v50 = vsel %vm1459_vm9, %v1458_v4, %v2474_v59 }
 0x18e   : > { %v1801_v46 = vpack.c.bf16 %v1491_v50, %v1490_v17 }
 0x190   : > { %1803 = vmatprep.subr.msk.bf16.mxu0 %vm3444_vm11, %v1801_v46 }
 0x191   : > { %1806 = vmatpush3.bf16.xpose.msk.msra.mxu0 %vm3444_vm11, %v1804_v39 }
 0x198   : > { %1758 = vmatmul.mubr.f32.vlgmr.msra.gmra.mrb[0].mxu0 %v3611_v55 }
 0x26b   : > { %v1592_v36 = vpop.f32.mrb[0].mxu0 }
 0x26c   : > { %1597 = vst [vmem:[%s165_s30] sm:$0xff] %v1592_v36  ;;  %v1594_v32 = vpop.f32.mrb[1].mxu0 }
 0x26d   : > { %1598 = vst [vmem:[%s165_s30 + $0x8] sm:$0xff] %v1594_v32 }
 0x26e PF: > { %s12_s11 = sadd.s32 1, %s2516_s11   ;;  %s3921_s9 = smov %s2512_s10 }
 0x26f   : > { %p9_p5 = scmp.ge.s32.totalorder %s12_s11, 4   ;;  %s3922_s10 = smov %s3924_s12 }
 0x271   :  { %11 = sbr.rel (!%p9_p5) target bundleno = 2 (0x2), region = 59 }

</bundles_post_ra>
